<compile_context>
chip_gen: v7x
topology: tpu7x:2x2x1
jax: 0.10.0
libtpu: 0.0.40
codegen_flags: <defaults>
</compile_context>

<pallas_src>
import functools

import numpy as np
import jax
import jax.numpy as jnp
from jax.experimental import pallas as pl
from jax.experimental.pallas import tpu as pltpu

VMEM_SPEC = pl.BlockSpec(memory_space=pltpu.MemorySpace.VMEM)


def _round_up(x, m):
    return ((x + m - 1) // m) * m


def _vmem_limit_bytes():
    """Generation-aware VMEM budget: ~112 MiB on v5e/v6e, ~48 MiB on v7x."""
    cap = None
    try:
        cap = getattr(pltpu.get_tpu_info(), "vmem_capacity_bytes", None)
    except Exception:
        cap = None
    if not cap:
        try:
            kind = jax.devices()[0].device_kind.lower()
        except Exception:
            kind = ""
        cap = 64 * 1024 * 1024 if "v7" in kind else 128 * 1024 * 1024
    return int(min(max(cap - 16 * 1024 * 1024, 32 * 1024 * 1024), 112 * 1024 * 1024))


def _mosaic_params():
    return pltpu.CompilerParams(vmem_limit_bytes=_vmem_limit_bytes())


# --------------------- kernel 1: fused GCN x3 + attention -------------------

def _fused_gcn_attn_kernel(adj_hbm, x_ref, w1_ref, b1_ref, w2_ref, b2_ref,
                           w3_ref, b3_ref, wa_ref, ba_ref,
                           weighted_ref, adj_vmem, copy_sems, *, n_chunks):
    f32 = jnp.float32
    bf16 = jnp.bfloat16
    n = adj_vmem.shape[0]
    chunk = n // n_chunks
    h = w1_ref.shape[1]

    # Kick off the adjacency HBM->VMEM DMA in row chunks so layer-1's adj@support
    # can start on chunk 0 while the remaining rows stream in.
    copies = []
    for c in range(n_chunks):
        cp = pltpu.make_async_copy(
            adj_hbm.at[pl.ds(c * chunk, chunk), :],
            adj_vmem.at[pl.ds(c * chunk, chunk), :],
            copy_sems.at[c])
        cp.start()
        copies.append(cp)

    # layer-1 support overlaps with the adjacency DMA
    support1 = jnp.dot(x_ref[...], w1_ref[...],
                       preferred_element_type=f32).astype(bf16)

    # layer 1: adj @ support consumed chunk-by-chunk as the DMA lands
    rows = []
    for c in range(n_chunks):
        copies[c].wait()
        rows.append(jnp.dot(adj_vmem[pl.ds(c * chunk, chunk), :], support1,
                            preferred_element_type=f32))
    g1 = jnp.maximum(jnp.concatenate(rows, axis=0) + b1_ref[...], 0.0)

    adj = adj_vmem[...]                                   # fully resident now

    def gcn_relu(h_in, w_ref, b_ref):
        support = jnp.dot(h_in, w_ref[...], preferred_element_type=f32).astype(bf16)
        out = jnp.dot(adj, support, preferred_element_type=f32)
        return jnp.maximum(out + b_ref[...], 0.0)

    g2 = gcn_relu(g1, w2_ref, b2_ref)
    g3 = gcn_relu(g2, w3_ref, b3_ref)

    # attention score, re-associated:  tanh(A @ (feat @ w) + b)
    wa = wa_ref[...]                                      # (3h, 1)
    fw = (jnp.dot(g1, wa[0:h, :], preferred_element_type=f32)
          + jnp.dot(g2, wa[h:2 * h, :], preferred_element_type=f32)
          + jnp.dot(g3, wa[2 * h:3 * h, :], preferred_element_type=f32))
    score = jnp.tanh(
        jnp.dot(adj, fw.astype(bf16), preferred_element_type=f32) + ba_ref[...])

    # Build the full lane-dense slab in registers and emit ONE full-width store:
    #   lanes [0,3h)   : concat(g1,g2,g3) * score     (pooled node features)
    #   lane  3h       : raw attention score          (read back for top-k)
    #   lane  3h+1     : 1.0                          (counts via sel@weighted MXU)
    #   lanes [3h+2,Fp): zero padding                 (fc1 rows there are zero)
    feat = jnp.concatenate([g1, g2, g3], axis=1) * score           # (Np, 3h)
    pieces = [feat, score, jnp.ones_like(score)]
    pad = weighted_ref.shape[1] - (3 * h + 2)
    if pad > 0:
        pieces.append(jnp.zeros((feat.shape[0], pad), f32))
    weighted_ref[...] = jnp.concatenate(pieces, axis=1)


def fused_gcn_attn(adj_bf16, x, w1, b1, w2, b2, w3, b3, wa, ba, f_pad):
    n = adj_bf16.shape[0]
    n_chunks = 2 if n < 256 else 4            # n is a multiple of 128 -> exact split
    kernel = functools.partial(_fused_gcn_attn_kernel, n_chunks=n_chunks)
    return pl.pallas_call(
        kernel,
        out_shape=jax.ShapeDtypeStruct((n, f_pad), jnp.float32),
        in_specs=[pl.BlockSpec(memory_space=pl.ANY)] + [VMEM_SPEC] * 9,
        out_specs=VMEM_SPEC,
        scratch_shapes=[pltpu.VMEM((n, n), jnp.bfloat16),
                        pltpu.SemaphoreType.DMA((n_chunks,))],
        compiler_params=_mosaic_params(),
    )(adj_bf16, x, w1, b1.reshape(1, -1), w2, b2.reshape(1, -1),
      w3, b3.reshape(1, -1), wa, ba.reshape(1, 1))


# ---------------------- kernel 2: fused readout + MLP head ------------------

def _readout_mlp_kernel(weighted_ref, sel_ref, keep_ref,
                        w1a_ref, w1m_ref, b1_ref, w2_ref, b2_ref,
                        w3_ref, b3_ref, logits_ref,
                        *, graph_offsets, graph_sizes, ones_lane):
    f32 = jnp.float32
    bf16 = jnp.bfloat16

    # Per-graph masked sums AND counts from a single bf16 MXU matmul
    # (sel is exact 0/1 in bf16; the ones-lane of `weighted` carries the counts).
    sums = jnp.dot(sel_ref[...].astype(bf16), weighted_ref[...].astype(bf16),
                   preferred_element_type=f32)                      # (Gp, Fp)
    counts = sums[:, ones_lane:ones_lane + 1]                       # (Gp, 1)
    avg = sums / jnp.maximum(counts, 1.0)

    # Per-graph masked max over the graph's contiguous node range: one pass over
    # (Np, Fp) total, per-graph maxes kept in registers (no VMEM scratch).
    big_neg = jnp.float32(-3e38)                # finite sentinel, no NaN propagation
    maxes = []
    for off, sz in zip(graph_offsets, graph_sizes):
        seg = weighted_ref[pl.ds(off, sz), :]                       # (sz, Fp)
        kc = keep_ref[pl.ds(off, sz), :]                            # (sz, 1)
        masked = jnp.where(kc > 0.0, seg, big_neg)
        maxes.append(jnp.max(masked, axis=0, keepdims=True))
    mx = jnp.concatenate(maxes, axis=0)                             # (G, Fp)
    g_pad = sel_ref.shape[0]
    g_real = len(graph_sizes)
    if g_pad > g_real:
        mx = jnp.concatenate(
            [mx, jnp.zeros((g_pad - g_real, mx.shape[1]), f32)], axis=0)
    mx = jnp.where(counts > 0.0, mx, 0.0)                           # empty-graph guard

    # MLP head; fc1 split into avg/max halves so no concat is needed.
    h1 = jnp.maximum(
        jnp.dot(avg, w1a_ref[...], preferred_element_type=f32)
        + jnp.dot(mx, w1m_ref[...], preferred_element_type=f32)
        + b1_ref[...], 0.0)
    h2 = jnp.maximum(
        jnp.dot(h1, w2_ref[...], preferred_element_type=f32) + b2_ref[...], 0.0)
    logits_ref[...] = (
        jnp.dot(h2, w3_ref[...], preferred_element_type=f32) + b3_ref[...])


def readout_mlp(weighted, sel, keep_col, w1a, w1m, b1, w2, b2, w3p, b3p,
                graph_sizes, ones_lane):
    gp = sel.shape[0]
    cp = w3p.shape[1]
    offs, acc = [], 0
    for s in graph_sizes:                      # graphs are contiguous node ranges
        offs.append(acc)
        acc += s
    kernel = functools.partial(_readout_mlp_kernel,
                               graph_offsets=tuple(offs),
                               graph_sizes=tuple(graph_sizes),
                               ones_lane=ones_lane)
    return pl.pallas_call(
        kernel,
        out_shape=jax.ShapeDtypeStruct((gp, cp), jnp.float32),
        in_specs=[VMEM_SPEC] * 10,
        out_specs=VMEM_SPEC,
        compiler_params=_mosaic_params(),
    )(weighted, sel, keep_col, w1a, w1m, b1.reshape(1, -1),
      w2, b2.reshape(1, -1), w3p, b3p.reshape(1, -1))


# ----------------- on-device top-k selection (mirrors top_rank) -------------

def build_selection(score_col, gi, kvec):
    """Per-graph descending top-k; single argsort + scatter, fully on device."""
    g_pad = kvec.shape[0]
    n_pad = score_col.shape[0]
    onehot = gi[None, :] == jnp.arange(g_pad, dtype=gi.dtype)[:, None]   # (Gp, Np)
    neg = jnp.float32(-3e38)
    score_mat = jnp.where(onehot, score_col[None, :], neg)
    order = jnp.argsort(-score_mat, axis=1)           # one sort (was two)
    col_rank = jnp.arange(n_pad)[None, :] < kvec[:, None]                # (Gp, Np)
    keep = jnp.zeros((g_pad, n_pad), dtype=bool).at[
        jnp.arange(g_pad)[:, None], order].set(col_rank)
    keep = keep & onehot
    sel = keep.astype(jnp.float32)                                       # (Gp, Np)
    keep_col = jnp.any(keep, axis=0).astype(jnp.float32)[:, None]        # (Np, 1)
    return sel, keep_col


# --------------------------------- forward ----------------------------------

@functools.partial(jax.jit, static_argnames=("graph_sizes", "hidden_dim"))
def model_a_forward(adj_bf16, x_pad, params, gi_pad, kvec, *, graph_sizes, hidden_dim):
    f_pad = params["fc1_w_avg"].shape[0]
    weighted = fused_gcn_attn(
        adj_bf16, x_pad,
        params["W1"], params["b1"], params["W2"], params["b2"],
        params["W3"], params["b3"], params["w_attn"], params["b_attn"], f_pad)
    score_lane = 3 * hidden_dim
    sel, keep_col = build_selection(weighted[:, score_lane], gi_pad, kvec)
    # TODO(synk): filter_adjacency / re-normalization of the pooled adjacency is
    # skipped - never consumed by ModelA.forward when producing the logits.
    logits_pad = readout_mlp(
        weighted, sel, keep_col,
        params["fc1_w_avg"], params["fc1_w_max"], params["fc1_b"],
        params["fc2_w"], params["fc2_b"],
        params["fc3_w_pad"], params["fc3_b_pad"],
        graph_sizes, score_lane + 1)
    return logits_pad


# ------------------------------ host-side setup ------------------------------

def kaiming_uniform(key, shape):
    fan_in = shape[1]
    bound = np.sqrt(6.0 / fan_in)
    return jax.random.uniform(key, shape, jnp.float32, -bound, bound)


def linear_init(key, fan_in, fan_out):
    kw, kb = jax.random.split(key)
    bound = 1.0 / np.sqrt(fan_in)
    w = jax.random.uniform(kw, (fan_in, fan_out), jnp.float32, -bound, bound)
    b = jax.random.uniform(kb, (fan_out,), jnp.float32, -bound, bound)
    return w, b


def build_normalized_adj(key, graph_sizes):
    n = sum(graph_sizes)
    adj = np.zeros((n, n), np.float32)
    off = 0
    for i, s in enumerate(graph_sizes):
        sub = np.asarray(
            jax.random.bernoulli(jax.random.fold_in(key, i), 0.4, (s, s)), np.float32)
        sub = np.triu(sub, 1)
        sub = sub + sub.T
        adj[off:off + s, off:off + s] = sub
        off += s
    adj = adj + np.eye(n, dtype=np.float32)            # A + I
    d_inv_sqrt = 1.0 / np.sqrt(adj.sum(1))
    return (adj * d_inv_sqrt[:, None]) * d_inv_sqrt[None, :]


# ----------------------------------- main ------------------------------------

if __name__ == "__main__":
    input_dim, hidden_dim, num_classes = 4, 8, 2
    keep_ratio = 0.5
    graph_sizes = (8, 8)
    n_nodes = sum(graph_sizes)
    num_graphs = len(graph_sizes)

    # n_pad rounded to 128 lanes (clean bf16 (16,128) MXU tiles for every adj@X pass)
    n_pad = _round_up(max(n_nodes, 128), 128)
    g_pad = _round_up(num_graphs, 8)
    f3 = hidden_dim * 3
    f_pad = _round_up(f3 + 2, 128)            # features | score lane | ones lane | pad
    c_pad = _round_up(num_classes, 128)       # lane-dense logits slab

    key = jax.random.PRNGKey(0)
    keys = jax.random.split(key, 12)

    adj = build_normalized_adj(keys[0], graph_sizes)                 # np (N, N)
    adj_pad = np.zeros((n_pad, n_pad), np.float32)
    adj_pad[:n_nodes, :n_nodes] = adj
    adj_bf16 = jnp.asarray(adj_pad, jnp.bfloat16)                    # bf16 for MXU

    x = jax.random.normal(keys[1], (n_nodes, input_dim), jnp.float32)
    x_pad = jnp.pad(x, ((0, n_pad - n_nodes), (0, 0)))

    gi = np.full((n_pad,), -1, np.int32)                             # -1 = padding node
    gi[:n_nodes] = np.concatenate(
        [np.full(s, i, np.int32) for i, s in enumerate(graph_sizes)])
    gi_pad = jnp.asarray(gi)

    kv = np.zeros((g_pad,), np.int32)
    kv[:num_graphs] = [int(keep_ratio * s) for s in graph_sizes]
    kvec = jnp.asarray(kv)

    fc1_w, fc1_b = linear_init(keys[6], f3 * 2, hidden_dim)
    fc2_w, fc2_b = linear_init(keys[7], hidden_dim, hidden_dim // 2)
    fc3_w, fc3_b = linear_init(keys[8], hidden_dim // 2, num_classes)

    params = {
        "W1": kaiming_uniform(keys[2], (input_dim, hidden_dim)),
        "b1": jnp.zeros((hidden_dim,), jnp.float32),
        "W2": kaiming_uniform(keys[3], (hidden_dim, hidden_dim)),
        "b2": jnp.zeros((hidden_dim,), jnp.float32),
        "W3": kaiming_uniform(keys[4], (hidden_dim, hidden_dim)),
        "b3": jnp.zeros((hidden_dim,), jnp.float32),
        "w_attn": kaiming_uniform(keys[5], (f3, 1)),                 # (3h, 1) column
        "b_attn": jnp.zeros((1,), jnp.float32),
        # fc1 split into avg/max halves; rows zero-padded to the f_pad slab so the
        # score/ones/padding lanes of `weighted` contribute nothing downstream.
        "fc1_w_avg": jnp.pad(fc1_w[:f3], ((0, f_pad - f3), (0, 0))),
        "fc1_w_max": jnp.pad(fc1_w[f3:], ((0, f_pad - f3), (0, 0))),
        "fc1_b": fc1_b,
        "fc2_w": fc2_w, "fc2_b": fc2_b,
        # fc3 columns zero-padded to a 128-lane slab.
        "fc3_w_pad": jnp.pad(fc3_w, ((0, 0), (0, c_pad - num_classes))),
        "fc3_b_pad": jnp.pad(fc3_b, (0, c_pad - num_classes)),
    }

    logits_pad = model_a_forward(adj_bf16, x_pad, params, gi_pad, kvec,
                                 graph_sizes=graph_sizes, hidden_dim=hidden_dim)
    logits = logits_pad[:num_graphs, :num_classes]
    jax.block_until_ready(logits)
    assert logits.shape == (num_graphs, num_classes)
    assert bool(jnp.all(jnp.isfinite(logits)))
    print("KERNEL_OK")
</pallas_src>

<mosaic_0001>
module attributes {stable_mosaic.version = 11 : i64} {
  func.func @_fused_gcn_attn_kernel(%arg0: memref<128x128xbf16, #tpu.memory_space<any>>, %arg1: memref<128x4xf32, #tpu.memory_space<vmem>>, %arg2: memref<4x8xf32, #tpu.memory_space<vmem>>, %arg3: memref<1x8xf32, #tpu.memory_space<vmem>>, %arg4: memref<8x8xf32, #tpu.memory_space<vmem>>, %arg5: memref<1x8xf32, #tpu.memory_space<vmem>>, %arg6: memref<8x8xf32, #tpu.memory_space<vmem>>, %arg7: memref<1x8xf32, #tpu.memory_space<vmem>>, %arg8: memref<24x1xf32, #tpu.memory_space<vmem>>, %arg9: memref<1x1xf32, #tpu.memory_space<vmem>>, %arg10: memref<128x128xf32, #tpu.memory_space<vmem>>, %arg11: memref<128x128xbf16, #tpu.memory_space<vmem>>, %arg12: memref<2x!tpu.dma_semaphore, #tpu.memory_space<semaphore_mem>>) attributes {dimension_semantics = [], scalar_prefetch = 0 : i64, scratch_operands = 2 : i64, tpu.core_type = #tpu.core_type<tc>} {
    %c0_i32 = arith.constant 0 : i32
    %c0_i32_0 = arith.constant 0 : i32
    %c0_i32_1 = arith.constant 0 : i32
    %0 = tpu.memref_slice %arg0[%c0_i32_0, %c0_i32_1] : memref<128x128xbf16, #tpu.memory_space<any>> -> memref<64x128xbf16, #tpu.memory_space<any>>
    %c0_i32_2 = arith.constant 0 : i32
    %c0_i32_3 = arith.constant 0 : i32
    %1 = tpu.memref_slice %arg11[%c0_i32_2, %c0_i32_3] : memref<128x128xbf16, #tpu.memory_space<vmem>> -> memref<64x128xbf16, #tpu.memory_space<vmem>>
    %2 = tpu.memref_slice %arg12[%c0_i32] : memref<2x!tpu.dma_semaphore, #tpu.memory_space<semaphore_mem>> -> memref<1x!tpu.dma_semaphore, #tpu.memory_space<semaphore_mem>>
    %3 = tpu.memref_squeeze %2 : memref<1x!tpu.dma_semaphore, #tpu.memory_space<semaphore_mem>> -> memref<!tpu.dma_semaphore, #tpu.memory_space<semaphore_mem>>
    tpu.enqueue_dma source(%0 : memref<64x128xbf16, #tpu.memory_space<any>>) target(%1 : memref<64x128xbf16, #tpu.memory_space<vmem>>) target_semaphore(%3 : memref<!tpu.dma_semaphore, #tpu.memory_space<semaphore_mem>>)
    %c1_i32 = arith.constant 1 : i32
    %c64_i32 = arith.constant 64 : i32
    %c0_i32_4 = arith.constant 0 : i32
    %4 = tpu.memref_slice %arg0[%c64_i32, %c0_i32_4] : memref<128x128xbf16, #tpu.memory_space<any>> -> memref<64x128xbf16, #tpu.memory_space<any>>
    %c64_i32_5 = arith.constant 64 : i32
    %c0_i32_6 = arith.constant 0 : i32
    %5 = tpu.memref_slice %arg11[%c64_i32_5, %c0_i32_6] : memref<128x128xbf16, #tpu.memory_space<vmem>> -> memref<64x128xbf16, #tpu.memory_space<vmem>>
    %6 = tpu.memref_slice %arg12[%c1_i32] : memref<2x!tpu.dma_semaphore, #tpu.memory_space<semaphore_mem>> -> memref<1x!tpu.dma_semaphore, #tpu.memory_space<semaphore_mem>>
    %7 = tpu.memref_squeeze %6 : memref<1x!tpu.dma_semaphore, #tpu.memory_space<semaphore_mem>> -> memref<!tpu.dma_semaphore, #tpu.memory_space<semaphore_mem>>
    tpu.enqueue_dma source(%4 : memref<64x128xbf16, #tpu.memory_space<any>>) target(%5 : memref<64x128xbf16, #tpu.memory_space<vmem>>) target_semaphore(%7 : memref<!tpu.dma_semaphore, #tpu.memory_space<semaphore_mem>>)
    %c0 = arith.constant 0 : index
    %c0_7 = arith.constant 0 : index
    %8 = vector.load %arg1[%c0, %c0_7] : memref<128x4xf32, #tpu.memory_space<vmem>>, vector<128x4xf32>
    %c0_8 = arith.constant 0 : index
    %c0_9 = arith.constant 0 : index
    %9 = vector.load %arg2[%c0_8, %c0_9] : memref<4x8xf32, #tpu.memory_space<vmem>>, vector<4x8xf32>
    %cst = arith.constant dense<0.000000e+00> : vector<128x8xf32>
    %10 = tpu.matmul %8, %9, %cst {dimension_numbers = #tpu.dot_dimension_numbers<[1], [0], [0], [1], [0, 0, 1, 1], [], []>} : vector<128x4xf32>, vector<4x8xf32>, vector<128x8xf32> -> vector<128x8xf32>
    %11 = arith.truncf %10 : vector<128x8xf32> to vector<128x8xbf16>
    %c0_i32_10 = arith.constant 0 : i32
    %c0_i32_11 = arith.constant 0 : i32
    %c0_i32_12 = arith.constant 0 : i32
    %12 = tpu.memref_slice %arg0[%c0_i32_11, %c0_i32_12] : memref<128x128xbf16, #tpu.memory_space<any>> -> memref<64x128xbf16, #tpu.memory_space<any>>
    %c0_i32_13 = arith.constant 0 : i32
    %c0_i32_14 = arith.constant 0 : i32
    %13 = tpu.memref_slice %arg11[%c0_i32_13, %c0_i32_14] : memref<128x128xbf16, #tpu.memory_space<vmem>> -> memref<64x128xbf16, #tpu.memory_space<vmem>>
    %14 = tpu.memref_slice %arg12[%c0_i32_10] : memref<2x!tpu.dma_semaphore, #tpu.memory_space<semaphore_mem>> -> memref<1x!tpu.dma_semaphore, #tpu.memory_space<semaphore_mem>>
    %15 = tpu.memref_squeeze %14 : memref<1x!tpu.dma_semaphore, #tpu.memory_space<semaphore_mem>> -> memref<!tpu.dma_semaphore, #tpu.memory_space<semaphore_mem>>
    tpu.wait_dma2 semaphore(%15 : memref<!tpu.dma_semaphore, #tpu.memory_space<semaphore_mem>>) src(%12 : memref<64x128xbf16, #tpu.memory_space<any>>) dst(%13 : memref<64x128xbf16, #tpu.memory_space<vmem>>)
    %c0_15 = arith.constant 0 : index
    %c0_16 = arith.constant 0 : index
    %16 = vector.load %arg11[%c0_15, %c0_16] : memref<128x128xbf16, #tpu.memory_space<vmem>>, vector<64x128xbf16>
    %cst_17 = arith.constant dense<0.000000e+00> : vector<64x8xf32>
    %17 = tpu.matmul %16, %11, %cst_17 {dimension_numbers = #tpu.dot_dimension_numbers<[1], [0], [0], [1], [0, 0, 1, 1], [], []>} : vector<64x128xbf16>, vector<128x8xbf16>, vector<64x8xf32> -> vector<64x8xf32>
    %c1_i32_18 = arith.constant 1 : i32
    %c64_i32_19 = arith.constant 64 : i32
    %c0_i32_20 = arith.constant 0 : i32
    %18 = tpu.memref_slice %arg0[%c64_i32_19, %c0_i32_20] : memref<128x128xbf16, #tpu.memory_space<any>> -> memref<64x128xbf16, #tpu.memory_space<any>>
    %c64_i32_21 = arith.constant 64 : i32
    %c0_i32_22 = arith.constant 0 : i32
    %19 = tpu.memref_slice %arg11[%c64_i32_21, %c0_i32_22] : memref<128x128xbf16, #tpu.memory_space<vmem>> -> memref<64x128xbf16, #tpu.memory_space<vmem>>
    %20 = tpu.memref_slice %arg12[%c1_i32_18] : memref<2x!tpu.dma_semaphore, #tpu.memory_space<semaphore_mem>> -> memref<1x!tpu.dma_semaphore, #tpu.memory_space<semaphore_mem>>
    %21 = tpu.memref_squeeze %20 : memref<1x!tpu.dma_semaphore, #tpu.memory_space<semaphore_mem>> -> memref<!tpu.dma_semaphore, #tpu.memory_space<semaphore_mem>>
    tpu.wait_dma2 semaphore(%21 : memref<!tpu.dma_semaphore, #tpu.memory_space<semaphore_mem>>) src(%18 : memref<64x128xbf16, #tpu.memory_space<any>>) dst(%19 : memref<64x128xbf16, #tpu.memory_space<vmem>>)
    %c64 = arith.constant 64 : index
    %c0_23 = arith.constant 0 : index
    %22 = vector.load %arg11[%c64, %c0_23] : memref<128x128xbf16, #tpu.memory_space<vmem>>, vector<64x128xbf16>
    %cst_24 = arith.constant dense<0.000000e+00> : vector<64x8xf32>
    %23 = tpu.matmul %22, %11, %cst_24 {dimension_numbers = #tpu.dot_dimension_numbers<[1], [0], [0], [1], [0, 0, 1, 1], [], []>} : vector<64x128xbf16>, vector<128x8xbf16>, vector<64x8xf32> -> vector<64x8xf32>
    %24 = tpu.concatenate %17, %23 in 0 : vector<64x8xf32>, vector<64x8xf32> -> vector<128x8xf32>
    %c0_25 = arith.constant 0 : index
    %c0_26 = arith.constant 0 : index
    %25 = vector.load %arg3[%c0_25, %c0_26] : memref<1x8xf32, #tpu.memory_space<vmem>>, vector<1x8xf32>
    %26 = vector.broadcast %25 : vector<1x8xf32> to vector<128x8xf32>
    %27 = arith.addf %24, %26 : vector<128x8xf32>
    %cst_27 = arith.constant 0.000000e+00 : f32
    %28 = vector.broadcast %cst_27 : f32 to vector<128x8xf32>
    %29 = arith.maximumf %27, %28 : vector<128x8xf32>
    %c0_28 = arith.constant 0 : index
    %c0_29 = arith.constant 0 : index
    %30 = vector.load %arg11[%c0_28, %c0_29] : memref<128x128xbf16, #tpu.memory_space<vmem>>, vector<128x128xbf16>
    %c0_30 = arith.constant 0 : index
    %c0_31 = arith.constant 0 : index
    %31 = vector.load %arg4[%c0_30, %c0_31] : memref<8x8xf32, #tpu.memory_space<vmem>>, vector<8x8xf32>
    %cst_32 = arith.constant dense<0.000000e+00> : vector<128x8xf32>
    %32 = tpu.matmul %29, %31, %cst_32 {dimension_numbers = #tpu.dot_dimension_numbers<[1], [0], [0], [1], [0, 0, 1, 1], [], []>} : vector<128x8xf32>, vector<8x8xf32>, vector<128x8xf32> -> vector<128x8xf32>
    %33 = arith.truncf %32 : vector<128x8xf32> to vector<128x8xbf16>
    %cst_33 = arith.constant dense<0.000000e+00> : vector<128x8xf32>
    %34 = tpu.matmul %30, %33, %cst_33 {dimension_numbers = #tpu.dot_dimension_numbers<[1], [0], [0], [1], [0, 0, 1, 1], [], []>} : vector<128x128xbf16>, vector<128x8xbf16>, vector<128x8xf32> -> vector<128x8xf32>
    %c0_34 = arith.constant 0 : index
    %c0_35 = arith.constant 0 : index
    %35 = vector.load %arg5[%c0_34, %c0_35] : memref<1x8xf32, #tpu.memory_space<vmem>>, vector<1x8xf32>
    %36 = vector.broadcast %35 : vector<1x8xf32> to vector<128x8xf32>
    %37 = arith.addf %34, %36 : vector<128x8xf32>
    %cst_36 = arith.constant 0.000000e+00 : f32
    %38 = vector.broadcast %cst_36 : f32 to vector<128x8xf32>
    %39 = arith.maximumf %37, %38 : vector<128x8xf32>
    %c0_37 = arith.constant 0 : index
    %c0_38 = arith.constant 0 : index
    %40 = vector.load %arg6[%c0_37, %c0_38] : memref<8x8xf32, #tpu.memory_space<vmem>>, vector<8x8xf32>
    %cst_39 = arith.constant dense<0.000000e+00> : vector<128x8xf32>
    %41 = tpu.matmul %39, %40, %cst_39 {dimension_numbers = #tpu.dot_dimension_numbers<[1], [0], [0], [1], [0, 0, 1, 1], [], []>} : vector<128x8xf32>, vector<8x8xf32>, vector<128x8xf32> -> vector<128x8xf32>
    %42 = arith.truncf %41 : vector<128x8xf32> to vector<128x8xbf16>
    %cst_40 = arith.constant dense<0.000000e+00> : vector<128x8xf32>
    %43 = tpu.matmul %30, %42, %cst_40 {dimension_numbers = #tpu.dot_dimension_numbers<[1], [0], [0], [1], [0, 0, 1, 1], [], []>} : vector<128x128xbf16>, vector<128x8xbf16>, vector<128x8xf32> -> vector<128x8xf32>
    %c0_41 = arith.constant 0 : index
    %c0_42 = arith.constant 0 : index
    %44 = vector.load %arg7[%c0_41, %c0_42] : memref<1x8xf32, #tpu.memory_space<vmem>>, vector<1x8xf32>
    %45 = vector.broadcast %44 : vector<1x8xf32> to vector<128x8xf32>
    %46 = arith.addf %43, %45 : vector<128x8xf32>
    %cst_43 = arith.constant 0.000000e+00 : f32
    %47 = vector.broadcast %cst_43 : f32 to vector<128x8xf32>
    %48 = arith.maximumf %46, %47 : vector<128x8xf32>
    %c0_44 = arith.constant 0 : index
    %c0_45 = arith.constant 0 : index
    %49 = vector.load %arg8[%c0_44, %c0_45] : memref<24x1xf32, #tpu.memory_space<vmem>>, vector<24x1xf32>
    %50 = vector.extract_strided_slice %49 {offsets = [0, 0], sizes = [8, 1], strides = [1, 1]} : vector<24x1xf32> to vector<8x1xf32>
    %cst_46 = arith.constant dense<0.000000e+00> : vector<128x1xf32>
    %51 = tpu.matmul %29, %50, %cst_46 {dimension_numbers = #tpu.dot_dimension_numbers<[1], [0], [0], [1], [0, 0, 1, 1], [], []>} : vector<128x8xf32>, vector<8x1xf32>, vector<128x1xf32> -> vector<128x1xf32>
    %52 = vector.extract_strided_slice %49 {offsets = [8, 0], sizes = [8, 1], strides = [1, 1]} : vector<24x1xf32> to vector<8x1xf32>
    %cst_47 = arith.constant dense<0.000000e+00> : vector<128x1xf32>
    %53 = tpu.matmul %39, %52, %cst_47 {dimension_numbers = #tpu.dot_dimension_numbers<[1], [0], [0], [1], [0, 0, 1, 1], [], []>} : vector<128x8xf32>, vector<8x1xf32>, vector<128x1xf32> -> vector<128x1xf32>
    %54 = arith.addf %51, %53 : vector<128x1xf32>
    %55 = vector.extract_strided_slice %49 {offsets = [16, 0], sizes = [8, 1], strides = [1, 1]} : vector<24x1xf32> to vector<8x1xf32>
    %cst_48 = arith.constant dense<0.000000e+00> : vector<128x1xf32>
    %56 = tpu.matmul %48, %55, %cst_48 {dimension_numbers = #tpu.dot_dimension_numbers<[1], [0], [0], [1], [0, 0, 1, 1], [], []>} : vector<128x8xf32>, vector<8x1xf32>, vector<128x1xf32> -> vector<128x1xf32>
    %57 = arith.addf %54, %56 : vector<128x1xf32>
    %58 = arith.truncf %57 : vector<128x1xf32> to vector<128x1xbf16>
    %cst_49 = arith.constant dense<0.000000e+00> : vector<128x1xf32>
    %59 = tpu.matmul %30, %58, %cst_49 {dimension_numbers = #tpu.dot_dimension_numbers<[1], [0], [0], [1], [0, 0, 1, 1], [], []>} : vector<128x128xbf16>, vector<128x1xbf16>, vector<128x1xf32> -> vector<128x1xf32>
    %c0_50 = arith.constant 0 : index
    %c0_51 = arith.constant 0 : index
    %60 = vector.load %arg9[%c0_50, %c0_51] : memref<1x1xf32, #tpu.memory_space<vmem>>, vector<1x1xf32>
    %61 = vector.broadcast %60 : vector<1x1xf32> to vector<128x1xf32>
    %62 = arith.addf %59, %61 : vector<128x1xf32>
    %63 = math.tanh %62 : vector<128x1xf32>
    %64 = tpu.concatenate %29, %39, %48 in 1 : vector<128x8xf32>, vector<128x8xf32>, vector<128x8xf32> -> vector<128x24xf32>
    %65 = vector.broadcast %63 : vector<128x1xf32> to vector<128x24xf32>
    %66 = arith.mulf %64, %65 : vector<128x24xf32>
    %cst_52 = arith.constant 1.000000e+00 : f32
    %67 = vector.broadcast %cst_52 : f32 to vector<128x1xf32>
    %cst_53 = arith.constant 0.000000e+00 : f32
    %68 = vector.broadcast %cst_53 : f32 to vector<128x102xf32>
    %69 = tpu.concatenate %66, %63, %67, %68 in 1 : vector<128x24xf32>, vector<128x1xf32>, vector<128x1xf32>, vector<128x102xf32> -> vector<128x128xf32>
    %c0_54 = arith.constant 0 : index
    %c0_55 = arith.constant 0 : index
    %70 = vector.load %arg10[%c0_54, %c0_55] : memref<128x128xf32, #tpu.memory_space<vmem>>, vector<128x128xf32>
    tpu.vector_store %arg10[%c0_54, %c0_55], %69 {strides = array<i32>} : memref<128x128xf32, #tpu.memory_space<vmem>>, vector<128x128xf32>,
    return
  }
}

module attributes {stable_mosaic.version = 11 : i64} {
  func.func @_readout_mlp_kernel(%arg0: memref<128x128xf32, #tpu.memory_space<vmem>>, %arg1: memref<8x128xf32, #tpu.memory_space<vmem>>, %arg2: memref<128x1xf32, #tpu.memory_space<vmem>>, %arg3: memref<128x8xf32, #tpu.memory_space<vmem>>, %arg4: memref<128x8xf32, #tpu.memory_space<vmem>>, %arg5: memref<1x8xf32, #tpu.memory_space<vmem>>, %arg6: memref<8x4xf32, #tpu.memory_space<vmem>>, %arg7: memref<1x4xf32, #tpu.memory_space<vmem>>, %arg8: memref<4x128xf32, #tpu.memory_space<vmem>>, %arg9: memref<1x128xf32, #tpu.memory_space<vmem>>, %arg10: memref<8x128xf32, #tpu.memory_space<vmem>>) attributes {dimension_semantics = [], scalar_prefetch = 0 : i64, scratch_operands = 0 : i64, tpu.core_type = #tpu.core_type<tc>} {
    %c0 = arith.constant 0 : index
    %c0_0 = arith.constant 0 : index
    %0 = vector.load %arg1[%c0, %c0_0] : memref<8x128xf32, #tpu.memory_space<vmem>>, vector<8x128xf32>
    %1 = arith.truncf %0 : vector<8x128xf32> to vector<8x128xbf16>
    %c0_1 = arith.constant 0 : index
    %c0_2 = arith.constant 0 : index
    %2 = vector.load %arg0[%c0_1, %c0_2] : memref<128x128xf32, #tpu.memory_space<vmem>>, vector<128x128xf32>
    %3 = arith.truncf %2 : vector<128x128xf32> to vector<128x128xbf16>
    %cst = arith.constant dense<0.000000e+00> : vector<8x128xf32>
    %4 = tpu.matmul %1, %3, %cst {dimension_numbers = #tpu.dot_dimension_numbers<[1], [0], [0], [1], [0, 0, 1, 1], [], []>} : vector<8x128xbf16>, vector<128x128xbf16>, vector<8x128xf32> -> vector<8x128xf32>
    %5 = vector.extract_strided_slice %4 {offsets = [0, 25], sizes = [8, 1], strides = [1, 1]} : vector<8x128xf32> to vector<8x1xf32>
    %cst_3 = arith.constant 1.000000e+00 : f32
    %6 = vector.broadcast %cst_3 : f32 to vector<8x1xf32>
    %7 = arith.maximumf %5, %6 : vector<8x1xf32>
    %8 = vector.broadcast %7 : vector<8x1xf32> to vector<8x128xf32>
    %9 = arith.divf %4, %8 : vector<8x128xf32>
    %c0_4 = arith.constant 0 : index
    %c0_5 = arith.constant 0 : index
    %10 = vector.load %arg0[%c0_4, %c0_5] : memref<128x128xf32, #tpu.memory_space<vmem>>, vector<8x128xf32>
    %c0_6 = arith.constant 0 : index
    %c0_7 = arith.constant 0 : index
    %11 = vector.load %arg2[%c0_6, %c0_7] : memref<128x1xf32, #tpu.memory_space<vmem>>, vector<8x1xf32>
    %cst_8 = arith.constant 0.000000e+00 : f32
    %12 = vector.broadcast %cst_8 : f32 to vector<8x1xf32>
    %13 = arith.cmpf ogt, %11, %12 : vector<8x1xf32>
    %cst_9 = arith.constant -3.000000e+38 : f32
    %14 = vector.shape_cast %13 : vector<8x1xi1> to vector<8x1xi1>
    %15 = vector.broadcast %14 : vector<8x1xi1> to vector<8x128xi1>
    %16 = vector.broadcast %cst_9 : f32 to vector<8x128xf32>
    %17 = arith.select %15, %10, %16 : vector<8x128xi1>, vector<8x128xf32>
    %cst_10 = arith.constant dense<0xFF800000> : vector<128xf32>
    %18 = vector.multi_reduction <maximumf>, %17, %cst_10 [0] : vector<8x128xf32> to vector<128xf32>
    %19 = vector.shape_cast %18 : vector<128xf32> to vector<1x128xf32>
    %c8 = arith.constant 8 : index
    %c0_11 = arith.constant 0 : index
    %20 = vector.load %arg0[%c8, %c0_11] : memref<128x128xf32, #tpu.memory_space<vmem>>, vector<8x128xf32>
    %c8_12 = arith.constant 8 : index
    %c0_13 = arith.constant 0 : index
    %21 = vector.load %arg2[%c8_12, %c0_13] : memref<128x1xf32, #tpu.memory_space<vmem>>, vector<8x1xf32>
    %cst_14 = arith.constant 0.000000e+00 : f32
    %22 = vector.broadcast %cst_14 : f32 to vector<8x1xf32>
    %23 = arith.cmpf ogt, %21, %22 : vector<8x1xf32>
    %cst_15 = arith.constant -3.000000e+38 : f32
    %24 = vector.shape_cast %23 : vector<8x1xi1> to vector<8x1xi1>
    %25 = vector.broadcast %24 : vector<8x1xi1> to vector<8x128xi1>
    %26 = vector.broadcast %cst_15 : f32 to vector<8x128xf32>
    %27 = arith.select %25, %20, %26 : vector<8x128xi1>, vector<8x128xf32>
    %cst_16 = arith.constant dense<0xFF800000> : vector<128xf32>
    %28 = vector.multi_reduction <maximumf>, %27, %cst_16 [0] : vector<8x128xf32> to vector<128xf32>
    %29 = vector.shape_cast %28 : vector<128xf32> to vector<1x128xf32>
    %30 = tpu.concatenate %19, %29 in 0 : vector<1x128xf32>, vector<1x128xf32> -> vector<2x128xf32>
    %cst_17 = arith.constant 0.000000e+00 : f32
    %31 = vector.broadcast %cst_17 : f32 to vector<6x128xf32>
    %32 = tpu.concatenate %30, %31 in 0 : vector<2x128xf32>, vector<6x128xf32> -> vector<8x128xf32>
    %cst_18 = arith.constant 0.000000e+00 : f32
    %33 = vector.broadcast %cst_18 : f32 to vector<8x1xf32>
    %34 = arith.cmpf ogt, %5, %33 : vector<8x1xf32>
    %cst_19 = arith.constant 0.000000e+00 : f32
    %35 = vector.shape_cast %34 : vector<8x1xi1> to vector<8x1xi1>
    %36 = vector.broadcast %35 : vector<8x1xi1> to vector<8x128xi1>
    %37 = vector.broadcast %cst_19 : f32 to vector<8x128xf32>
    %38 = arith.select %36, %32, %37 : vector<8x128xi1>, vector<8x128xf32>
    %c0_20 = arith.constant 0 : index
    %c0_21 = arith.constant 0 : index
    %39 = vector.load %arg3[%c0_20, %c0_21] : memref<128x8xf32, #tpu.memory_space<vmem>>, vector<128x8xf32>
    %cst_22 = arith.constant dense<0.000000e+00> : vector<8x8xf32>
    %40 = tpu.matmul %9, %39, %cst_22 {dimension_numbers = #tpu.dot_dimension_numbers<[1], [0], [0], [1], [0, 0, 1, 1], [], []>} : vector<8x128xf32>, vector<128x8xf32>, vector<8x8xf32> -> vector<8x8xf32>
    %c0_23 = arith.constant 0 : index
    %c0_24 = arith.constant 0 : index
    %41 = vector.load %arg4[%c0_23, %c0_24] : memref<128x8xf32, #tpu.memory_space<vmem>>, vector<128x8xf32>
    %cst_25 = arith.constant dense<0.000000e+00> : vector<8x8xf32>
    %42 = tpu.matmul %38, %41, %cst_25 {dimension_numbers = #tpu.dot_dimension_numbers<[1], [0], [0], [1], [0, 0, 1, 1], [], []>} : vector<8x128xf32>, vector<128x8xf32>, vector<8x8xf32> -> vector<8x8xf32>
    %43 = arith.addf %40, %42 : vector<8x8xf32>
    %c0_26 = arith.constant 0 : index
    %c0_27 = arith.constant 0 : index
    %44 = vector.load %arg5[%c0_26, %c0_27] : memref<1x8xf32, #tpu.memory_space<vmem>>, vector<1x8xf32>
    %45 = vector.broadcast %44 : vector<1x8xf32> to vector<8x8xf32>
    %46 = arith.addf %43, %45 : vector<8x8xf32>
    %cst_28 = arith.constant 0.000000e+00 : f32
    %47 = vector.broadcast %cst_28 : f32 to vector<8x8xf32>
    %48 = arith.maximumf %46, %47 : vector<8x8xf32>
    %c0_29 = arith.constant 0 : index
    %c0_30 = arith.constant 0 : index
    %49 = vector.load %arg6[%c0_29, %c0_30] : memref<8x4xf32, #tpu.memory_space<vmem>>, vector<8x4xf32>
    %cst_31 = arith.constant dense<0.000000e+00> : vector<8x4xf32>
    %50 = tpu.matmul %48, %49, %cst_31 {dimension_numbers = #tpu.dot_dimension_numbers<[1], [0], [0], [1], [0, 0, 1, 1], [], []>} : vector<8x8xf32>, vector<8x4xf32>, vector<8x4xf32> -> vector<8x4xf32>
    %c0_32 = arith.constant 0 : index
    %c0_33 = arith.constant 0 : index
    %51 = vector.load %arg7[%c0_32, %c0_33] : memref<1x4xf32, #tpu.memory_space<vmem>>, vector<1x4xf32>
    %52 = vector.broadcast %51 : vector<1x4xf32> to vector<8x4xf32>
    %53 = arith.addf %50, %52 : vector<8x4xf32>
    %cst_34 = arith.constant 0.000000e+00 : f32
    %54 = vector.broadcast %cst_34 : f32 to vector<8x4xf32>
    %55 = arith.maximumf %53, %54 : vector<8x4xf32>
    %c0_35 = arith.constant 0 : index
    %c0_36 = arith.constant 0 : index
    %56 = vector.load %arg8[%c0_35, %c0_36] : memref<4x128xf32, #tpu.memory_space<vmem>>, vector<4x128xf32>
    %cst_37 = arith.constant dense<0.000000e+00> : vector<8x128xf32>
    %57 = tpu.matmul %55, %56, %cst_37 {dimension_numbers = #tpu.dot_dimension_numbers<[1], [0], [0], [1], [0, 0, 1, 1], [], []>} : vector<8x4xf32>, vector<4x128xf32>, vector<8x128xf32> -> vector<8x128xf32>
    %c0_38 = arith.constant 0 : index
    %c0_39 = arith.constant 0 : index
    %58 = vector.load %arg9[%c0_38, %c0_39] : memref<1x128xf32, #tpu.memory_space<vmem>>, vector<1x128xf32>
    %59 = vector.broadcast %58 : vector<1x128xf32> to vector<8x128xf32>
    %60 = arith.addf %57, %59 : vector<8x128xf32>
    %c0_40 = arith.constant 0 : index
    %c0_41 = arith.constant 0 : index
    %61 = vector.load %arg10[%c0_40, %c0_41] : memref<8x128xf32, #tpu.memory_space<vmem>>, vector<8x128xf32>
    tpu.vector_store %arg10[%c0_40, %c0_41], %60 {strides = array<i32>} : memref<8x128xf32, #tpu.memory_space<vmem>>, vector<8x128xf32>,
    return
  }
}

</mosaic_0001>

<bundles_post_ra>
// kernel: model_a_forward.3
= control target key start
LH: loop header
LB: loop body
LE: loop exit
PB: predicated region body
PF: predicated region fallthrough
CT: control target
= control target key end

     0   :  { %15 = vsyncpa [#allocation3], 0  ;;  %s1393_s0 = inlined_call_operand.hbm [shape: f32[128,128], index: 0, kind: input, shape index: {}]   ;;  %s1394_s1 = inlined_call_operand.hbm [shape: f32[8,128], index: 1, kind: input, shape index: {}]   ;;  %s1395_s2 = inlined_call_operand.hbm [shape: f32[128,1], index: 2, kind: input, shape index: {}]   ;;  %s1396_s3 = inlined_call_operand.hbm [shape: f32[128,8], index: 3, kind: input, shape index: {}]   ;;  %s1397_s4 = inlined_call_operand.hbm [shape: f32[128,8], index: 4, kind: input, shape index: {}]   ;;  %s1398_s5 = inlined_call_operand.hbm [shape: f32[1,8], index: 5, kind: input, shape index: {}]   ;;  %s1399_s6 = inlined_call_operand.hbm [shape: f32[8,4], index: 6, kind: input, shape index: {}]   ;;  %s1400_s7 = inlined_call_operand.hbm [shape: f32[1,4], index: 7, kind: input, shape index: {}]   ;;  %s1401_s8 = inlined_call_operand.hbm [shape: f32[4,128], index: 8, kind: input, shape index: {}]   ;;  %s1402_s9 = inlined_call_operand.hbm [shape: f32[1,128], index: 9, kind: input, shape index: {}]   ;;  %s1403_s10 = inlined_call_operand.hbm [shape: f32[8,128], index: 10, kind: output, shape index: {}]  }
   0x1   :  { %16 = vsyncpa [#allocation6], 0 }
   0x2   :  { %17 = vsyncpa [#allocation9], 0 }
   0x3   :  { %18 = vsyncpa [#allocation12], 0 }
   0x4   :  { %19 = vsyncpa [#allocation15], 0 }
   0x5   :  { %20 = vsyncpa [#allocation18], 0 }
   0x6   :  { %21 = vsyncpa [#allocation4], 0  ;;  %s1128_s13 = smov [#allocation5]   ;;  %s872_s17 = scalar_lea.hbm %s1394_s1, 128 }
   0x7   :  { %s40_s14 = sshll.u32 %s1128_s13, 4  ;;  %p873_p0 = scmp.ne.s32.totalorder %s1394_s1, %s872_s17  ;;  %s41_s14 = int_to_ptr.vmem [resolvable:$true] %s40_s14 }
   0x8   :  { %p876_p1 = scmp.lt.u32.totalorder %s872_s17, %s1394_s1 }
   0xa   :  { %p878_p2 = pnand %p876_p1, %p873_p0 }
   0xc   :  { %881 = shalt.err (!%p878_p2)
}
   0xd   :  { %s882_s22 = scalar_lea.vmem %s41_s14, 128  ;;  %p887_p4 = scmp.lt.s32.totalorder %s41_s14, %s41_s14 }
   0xe   :  { %p883_p3 = scmp.ne.s32.totalorder %s41_s14, %s882_s22  ;;  %p888_p5 = scmp.lt.s32.totalorder %s882_s22, %s882_s22 }
  0x10   :  { %p889_p6 = por %p888_p5, %p887_p4 }
  0x12   :  { %p890_p7 = pnand %p889_p6, %p883_p3 }
  0x14   :  { %893 = shalt.err (!%p890_p7)
}
  0x15   :  { %43 = dma.hbm_to_vmem [thread:$0]  %s1394_s1, 128, %s41_s14, [#allocation6]  }
  0x16   :  { %s1129_s25 = smov [#allocation8]   ;;  %s1130_s27 = smov [#allocation11]  }
  0x17   :  { %s61_s26 = sshll.u32 %s1129_s25, 4  ;;  %s86_s28 = sshll.u32 %s1130_s27, 4  ;;  %s62_s26 = int_to_ptr.vmem [resolvable:$true] %s61_s26  ;;  %s87_s28 = int_to_ptr.vmem [resolvable:$true] %s86_s28 }
  0x18   :  { %s894_s11 = scalar_lea.hbm %s1396_s3, 2048 }
  0x19   :  { %p895_p8 = scmp.ne.s32.totalorder %s1396_s3, %s894_s11  ;;  %p898_p9 = scmp.lt.u32.totalorder %s894_s11, %s1396_s3 }
  0x1b   :  { %p900_p10 = pnand %p898_p9, %p895_p8 }
  0x1d   :  { %903 = shalt.err (!%p900_p10)
}
  0x1e   :  { %s904_s1 = scalar_lea.vmem %s62_s26, 2048  ;;  %p909_p12 = scmp.lt.s32.totalorder %s62_s26, %s62_s26 }
  0x1f   :  { %p905_p11 = scmp.ne.s32.totalorder %s62_s26, %s904_s1  ;;  %p910_p13 = scmp.lt.s32.totalorder %s904_s1, %s904_s1 }
  0x21   :  { %p911_p0 = por %p910_p13, %p909_p12 }
  0x23   :  { %p912_p1 = pnand %p911_p0, %p905_p11 }
  0x25   :  { %915 = shalt.err (!%p912_p1)
}
  0x26   :  { %s1131_s14 = smov 128   ;;  %s1132_s17 = smov 8  }
  0x27   :  { %67 = dma.hbm_to_vmem [thread:$0]  %s1396_s3, 2048, %s62_s26, [#allocation9], %s1131_s14, %s1131_s14, %s1132_s17  }
  0x28   :  { %s916_s22 = scalar_lea.hbm %s1398_s5, 16 }
  0x29   :  { %p917_p2 = scmp.ne.s32.totalorder %s1398_s5, %s916_s22  ;;  %p920_p3 = scmp.lt.u32.totalorder %s916_s22, %s1398_s5 }
  0x2b   :  { %p922_p4 = pnand %p920_p3, %p917_p2 }
  0x2d   :  { %925 = shalt.err (!%p922_p4)
}
  0x2e   :  { %s926_s29 = scalar_lea.vmem %s87_s28, 16  ;;  %s930_s30 = scalar_lea.vmem %s87_s28, 32 }
  0x2f   :  { %p927_p5 = scmp.ne.s32.totalorder %s87_s28, %s926_s29  ;;  %p931_p6 = scmp.lt.s32.totalorder %s87_s28, %s87_s28 }
  0x30   :  { %p932_p7 = scmp.lt.s32.totalorder %s930_s30, %s926_s29 }
  0x32   :  { %p933_p8 = por %p932_p7, %p931_p6 }
  0x34   :  { %p934_p9 = pnand %p933_p8, %p927_p5 }
  0x36   :  { %937 = shalt.err (!%p934_p9)
}
  0x37   :  { %89 = dma.hbm_to_vmem [thread:$0]  %s1398_s5, 16, %s87_s28, [#allocation12]  }
  0x38   :  { %s1133_s11 = smov [#allocation14]   ;;  %s1134_s13 = smov [#allocation2]  }
  0x39   :  { %s106_s12 = sshll.u32 %s1133_s11, 4  ;;  %s27_s15 = sshll.u32 %s1134_s13, 4  ;;  %s107_s12 = int_to_ptr.vmem [resolvable:$true] %s106_s12  ;;  %s28_s15 = int_to_ptr.vmem [resolvable:$true] %s27_s15 }
  0x3a   :  { %s938_s18 = scalar_lea.hbm %s1400_s7, 16 }
  0x3b   :  { %p939_p10 = scmp.ne.s32.totalorder %s1400_s7, %s938_s18  ;;  %p942_p11 = scmp.lt.u32.totalorder %s938_s18, %s1400_s7 }
  0x3d   :  { %p944_p12 = pnand %p942_p11, %p939_p10 }
  0x3f   :  { %947 = shalt.err (!%p944_p12)
}
  0x40   :  { %s948_s5 = scalar_lea.vmem %s107_s12, 16  ;;  %s952_s28 = scalar_lea.vmem %s107_s12, 32 }
  0x41   :  { %p949_p13 = scmp.ne.s32.totalorder %s107_s12, %s948_s5  ;;  %p953_p0 = scmp.lt.s32.totalorder %s107_s12, %s107_s12 }
  0x42   :  { %p954_p1 = scmp.lt.s32.totalorder %s952_s28, %s948_s5 }
  0x44   :  { %p955_p2 = por %p954_p1, %p953_p0 }
  0x46   :  { %p956_p3 = pnand %p955_p2, %p949_p13 }
  0x48   :  { %959 = shalt.err (!%p956_p3)
}
  0x49   :  { %109 = dma.hbm_to_vmem [thread:$0]  %s1400_s7, 16, %s107_s12, [#allocation15]  }
  0x4a   :  { %s960_s29 = scalar_lea.hbm %s1393_s0, 2048 }
  0x4b   :  { %p961_p4 = scmp.ne.s32.totalorder %s1393_s0, %s960_s29  ;;  %p964_p5 = scmp.lt.u32.totalorder %s960_s29, %s1393_s0 }
  0x4d   :  { %p966_p6 = pnand %p964_p5, %p961_p4 }
  0x4f   :  { %969 = shalt.err (!%p966_p6)
}
  0x50   :  { %s970_s13 = scalar_lea.vmem %s28_s15, 2048  ;;  %p975_p8 = scmp.lt.s32.totalorder %s28_s15, %s28_s15 }
  0x51   :  { %p971_p7 = scmp.ne.s32.totalorder %s28_s15, %s970_s13  ;;  %p976_p9 = scmp.lt.s32.totalorder %s970_s13, %s970_s13 }
  0x53   :  { %p977_p10 = por %p976_p9, %p975_p8 }
  0x55   :  { %p978_p11 = pnand %p977_p10, %p971_p7 }
  0x57   :  { %981 = shalt.err (!%p978_p11)
}
  0x58   :  { %33 = dma.hbm_to_vmem [thread:$0]  %s1393_s0, 2048, %s28_s15, [#allocation3], %s1131_s14, %s1131_s14, %s1132_s17  }
  0x59   :  { %s1135_s16 = smov [#allocation7]   ;;  %s1136_s18 = smov [#allocation10]  }
  0x5a   :  { %s49_s1 = sshll.u32 %s1135_s16, 4  ;;  %s73_s19 = sshll.u32 %s1136_s18, 4  ;;  %s50_s1 = int_to_ptr.vmem [resolvable:$true] %s49_s1  ;;  %s74_s19 = int_to_ptr.vmem [resolvable:$true] %s73_s19 }
  0x5b   :  { %s982_s22 = scalar_lea.hbm %s1395_s2, 2048 }
  0x5c   :  { %p983_p12 = scmp.ne.s32.totalorder %s1395_s2, %s982_s22  ;;  %p986_p13 = scmp.lt.u32.totalorder %s982_s22, %s1395_s2 }
  0x5e   :  { %p988_p0 = pnand %p986_p13, %p983_p12 }
  0x60   :  { %991 = shalt.err (!%p988_p0)
}
  0x61   :  { %s992_s0 = scalar_lea.vmem %s50_s1, 2048  ;;  %p997_p2 = scmp.lt.s32.totalorder %s50_s1, %s50_s1 }
  0x62   :  { %p993_p1 = scmp.ne.s32.totalorder %s50_s1, %s992_s0  ;;  %p998_p3 = scmp.lt.s32.totalorder %s992_s0, %s992_s0 }
  0x64   :  { %p999_p4 = por %p998_p3, %p997_p2 }
  0x66   :  { %p1000_p5 = pnand %p999_p4, %p993_p1 }
  0x68   :  { %1003 = shalt.err (!%p1000_p5)
}
  0x69   :  { %55 = dma.hbm_to_vmem [thread:$0]  %s1395_s2, 2048, %s50_s1, [#allocation6], %s1131_s14, %s1131_s14, %s1132_s17  }
  0x6a   :  { %s1004_s30 = scalar_lea.hbm %s1397_s4, 2048 }
  0x6b   :  { %p1005_p6 = scmp.ne.s32.totalorder %s1397_s4, %s1004_s30  ;;  %p1008_p7 = scmp.lt.u32.totalorder %s1004_s30, %s1397_s4 }
  0x6d   :  { %p1010_p8 = pnand %p1008_p7, %p1005_p6 }
  0x6f   :  { %1013 = shalt.err (!%p1010_p8)
}
  0x70   :  { %s1014_s7 = scalar_lea.vmem %s74_s19, 2048  ;;  %p1019_p10 = scmp.lt.s32.totalorder %s74_s19, %s74_s19 }
  0x71   :  { %p1015_p9 = scmp.ne.s32.totalorder %s74_s19, %s1014_s7  ;;  %p1020_p11 = scmp.lt.s32.totalorder %s1014_s7, %s1014_s7 }
  0x73   :  { %p1021_p12 = por %p1020_p11, %p1019_p10 }
  0x75   :  { %p1022_p13 = pnand %p1021_p12, %p1015_p9 }
  0x77   :  { %1025 = shalt.err (!%p1022_p13)
}
  0x78   :  { %79 = dma.hbm_to_vmem [thread:$0]  %s1397_s4, 2048, %s74_s19, [#allocation9], %s1131_s14, %s1131_s14, %s1132_s17  }
  0x79   :  { %s1137_s16 = smov [#allocation13]   ;;  %s1138_s18 = smov [#allocation16]  }
  0x7a   :  { %s96_s1 = sshll.u32 %s1137_s16, 4  ;;  %s116_s20 = sshll.u32 %s1138_s18, 4  ;;  %s97_s1 = int_to_ptr.vmem [resolvable:$true] %s96_s1  ;;  %s117_s20 = int_to_ptr.vmem [resolvable:$true] %s116_s20 }
  0x7b   :  { %s1026_s5 = scalar_lea.hbm %s1399_s6, 128 }
  0x7c   :  { %p1027_p0 = scmp.ne.s32.totalorder %s1399_s6, %s1026_s5  ;;  %p1030_p1 = scmp.lt.u32.totalorder %s1026_s5, %s1399_s6 }
  0x7e   :  { %p1032_p2 = pnand %p1030_p1, %p1027_p0 }
  0x80   :  { %1035 = shalt.err (!%p1032_p2)
}
  0x81   :  { %s1036_s4 = scalar_lea.vmem %s97_s1, 128  ;;  %p1041_p4 = scmp.lt.s32.totalorder %s97_s1, %s97_s1 }
  0x82   :  { %p1037_p3 = scmp.ne.s32.totalorder %s97_s1, %s1036_s4  ;;  %p1042_p5 = scmp.lt.s32.totalorder %s1036_s4, %s1036_s4 }
  0x84   :  { %p1043_p6 = por %p1042_p5, %p1041_p4 }
  0x86   :  { %p1044_p7 = pnand %p1043_p6, %p1037_p3 }
  0x88   :  { %1047 = shalt.err (!%p1044_p7)
}
  0x89   :  { %99 = dma.hbm_to_vmem [thread:$0]  %s1399_s6, 128, %s97_s1, [#allocation12]  }
  0x8a   :  { %s1048_s25 = scalar_lea.hbm %s1401_s8, 64 }
  0x8b   :  { %p1049_p8 = scmp.ne.s32.totalorder %s1401_s8, %s1048_s25  ;;  %p1052_p9 = scmp.lt.u32.totalorder %s1048_s25, %s1401_s8 }
  0x8d   :  { %p1054_p10 = pnand %p1052_p9, %p1049_p8 }
  0x8f   :  { %1057 = shalt.err (!%p1054_p10)
}
  0x90   :  { %s1058_s26 = scalar_lea.vmem %s117_s20, 64  ;;  %p1063_p12 = scmp.lt.s32.totalorder %s117_s20, %s117_s20 }
  0x91   :  { %p1059_p11 = scmp.ne.s32.totalorder %s117_s20, %s1058_s26  ;;  %p1064_p13 = scmp.lt.s32.totalorder %s1058_s26, %s1058_s26 }
  0x93   :  { %p1065_p0 = por %p1064_p13, %p1063_p12 }
  0x95   :  { %p1066_p1 = pnand %p1065_p0, %p1059_p11 }
  0x97   :  { %1069 = shalt.err (!%p1066_p1)
}
  0x98   :  { %119 = dma.hbm_to_vmem [thread:$0]  %s1401_s8, 64, %s117_s20, [#allocation15]  }
  0x99   :  { %s1139_s13 = smov [#allocation17]   ;;  %s1070_s16 = scalar_lea.hbm %s1402_s9, 16 }
  0x9a   :  { %s126_s7 = sshll.u32 %s1139_s13, 4  ;;  %p1071_p2 = scmp.ne.s32.totalorder %s1402_s9, %s1070_s16  ;;  %s127_s7 = int_to_ptr.vmem [resolvable:$true] %s126_s7 }
  0x9b   :  { %p1074_p3 = scmp.lt.u32.totalorder %s1070_s16, %s1402_s9 }
  0x9d   :  { %p1076_p4 = pnand %p1074_p3, %p1071_p2 }
  0x9f   :  { %1079 = shalt.err (!%p1076_p4)
}
  0xa0   :  { %s1080_s5 = scalar_lea.vmem %s127_s7, 16  ;;  %s1084_s8 = scalar_lea.vmem %s127_s7, 32 }
  0xa1   :  { %p1081_p5 = scmp.ne.s32.totalorder %s127_s7, %s1080_s5  ;;  %p1085_p6 = scmp.lt.s32.totalorder %s127_s7, %s127_s7 }
  0xa2   :  { %p1086_p7 = scmp.lt.s32.totalorder %s1084_s8, %s1080_s5 }
  0xa4   :  { %p1087_p8 = por %p1086_p7, %p1085_p6 }
  0xa6   :  { %p1088_p9 = pnand %p1087_p8, %p1081_p5 }
  0xa8   :  { %1091 = shalt.err (!%p1088_p9)
}
  0xa9   :  { %129 = dma.hbm_to_vmem [thread:$0]  %s1402_s9, 16, %s127_s7, [#allocation18]  }
  0xaa   :  { %1114 = dma.done.wait [#allocation3], 2048  }
  0xab   :  { %1115 = vsyncadd [#allocation3], 4294965248 }
  0xac   :  { %1116 = dma.done.wait [#allocation6], 2176  }
  0xad   :  { %1117 = vsyncadd [#allocation6], 4294965120 }
  0xae   :  { %1118 = dma.done.wait [#allocation9], 4096  }
  0xaf   :  { %1119 = vsyncadd [#allocation9], 4294963200 }
  0xb0   :  { %1120 = dma.done.wait [#allocation12], 144  }
  0xb1   :  { %1121 = vsyncadd [#allocation12], 4294967152 }
  0xb2   :  { %1122 = dma.done.wait [#allocation15], 80  }
  0xb3   :  { %1123 = vsyncadd [#allocation15], 4294967216 }
  0xb4   :  { %1124 = dma.done.wait [#allocation18], 16  }
  0xb5   :  { %1125 = vsyncadd [#allocation18], 4294967280  ;;  %v1140_v0 = vmov 0.0   ;;  %vm1141_vm0 = vmmov 0   ;;  %v1142_v1 = vmov 0   ;;  %v1339_v2 = vld [vmem:[#allocation2] sm:$0xff] }
  0xb6   :  { %701 = vmatprep.subr.bf16.mxu0 %v1140_v0  ;;  %717 = vmatprep.mubr.msk.bf16.mxu0 %vm1141_vm0, %v1140_v0  ;;  %v1341_v3 = vld [vmem:[#allocation2 + $0x8] sm:$0xff]  ;;  %v165_v4 = vld [vmem:[#allocation2 + $0x10] sm:$0xff]  ;;  %v166_v6 = vld [vmem:[#allocation2 + $0x18] sm:$0xff]  ;;  %v1143_v32 = vmov 25   ;;  %v1144_v36 = vmov 0.0|0.0   ;;  %vm265_vm6 = vcmask 1040384  }
  0xb7   :  { %867 = vset.pattern.permute.xlu0 %v1142_v1  ;;  %753 = vmatprep.mubr.msk.f32.mxu1 %vm1141_vm0, %v1140_v0  ;;  %v179_v5 = vpack.c.bf16 %v1341_v3, %v1339_v2  ;;  %v180_v7 = vpack.c.bf16 %v166_v6, %v165_v4  ;;  %v167_v8 = vld [vmem:[#allocation2 + $0x20] sm:$0xff]  ;;  %v168_v9 = vld [vmem:[#allocation2 + $0x28] sm:$0xff]  ;;  %v251_v11 = vld [vmem:[#allocation7 + $0x8] sm:$0xff]  ;;  %vm267_vm7 = vcmask 1041408   ;;  %vm465_vm9 = vcmask 64512   ;;  %s1145_s9 = smov [#allocation19]  }
  0xb8   :  { %v236_v10 = vld [vmem:[#allocation7] sm:$0xff]  ;;  %v181_v12 = vpack.c.bf16 %v168_v9, %v167_v8  ;;  %vm252_vm2 = vcmp.gt.f32.partialorder %v251_v11, 0.0  ;;  %v169_v14 = vld [vmem:[#allocation2 + $0x30] sm:$0xff]  ;;  %v170_v15 = vld [vmem:[#allocation2 + $0x38] sm:$0xff]  ;;  %868 = vset.pattern.permute.xlu1 %v1143_v32  ;;  %801 = vmatprep.subr.bf16.mxu1 %v1144_v36  ;;  %vm552_vm10 = vcmask 1043456   ;;  %vm548_vm11 = vcmask 31744  }
  0xb9   :  { %702 = vmatpush3.bf16.msra.mxu0 %v179_v5  ;;  %vm237_vm1 = vcmp.gt.f32.partialorder %v236_v10, 0.0  ;;  %v253_v16 = vsel %vm252_vm2, 1, %v1142_v1  ;;  %v182_v17 = vpack.c.bf16 %v170_v15, %v169_v14  ;;  %v171_v18 = vld [vmem:[#allocation2 + $0x40] sm:$0xff]  ;;  %v172_v19 = vld [vmem:[#allocation2 + $0x48] sm:$0xff]  ;;  %v173_v21 = vld [vmem:[#allocation2 + $0x50] sm:$0xff]  ;;  %s633_s23 = sshll.u32 %s1145_s9, 4  ;;  %s634_s23 = int_to_ptr.vmem [resolvable:$true] %s633_s23 }
  0xba   :  { %703 = vmatprep.subr.bf16.mxu0 %v1140_v0  ;;  %v238_v13 = vsel %vm237_vm1, 1, %v1142_v1  ;;  %v183_v20 = vpack.c.bf16 %v172_v19, %v171_v18  ;;  %v174_v22 = vld [vmem:[#allocation2 + $0x58] sm:$0xff]  ;;  %v175_v24 = vld [vmem:[#allocation2 + $0x60] sm:$0xff]  ;;  %v176_v25 = vld [vmem:[#allocation2 + $0x68] sm:$0xff]  ;;  %s1092_s24 = scalar_lea.vmem %s634_s23, 128  ;;  %p1097_p11 = scmp.lt.s32.totalorder %s634_s23, %s634_s23 }
  0xbb   :  { %240 = vperm.xlu0 %867, %v238_v13   ;;  %v184_v23 = vpack.c.bf16 %v174_v22, %v173_v21  ;;  %v185_v26 = vpack.c.bf16 %v176_v25, %v175_v24  ;;  %v177_v27 = vld [vmem:[#allocation2 + $0x70] sm:$0xff]  ;;  %v178_v28 = vld [vmem:[#allocation2 + $0x78] sm:$0xff]  ;;  %v161_v30 = vld [vmem:[#allocation5] sm:$0xff]  ;;  %p1093_p10 = scmp.ne.s32.totalorder %s634_s23, %s1092_s24  ;;  %p1098_p12 = scmp.lt.s32.totalorder %s1092_s24, %s1092_s24 }
  0xbc   :  { %v186_v29 = vpack.c.bf16 %v178_v28, %v177_v27  ;;  %v162_v31 = vpack.c.bf16 %v161_v30, %v161_v30  ;;  %v292_v33 = vld [vmem:[#allocation10] sm:$0xff]  ;;  %v293_v34 = vld [vmem:[#allocation10 + $0x8] sm:$0xff]  ;;  %v294_v35 = vld [vmem:[#allocation10 + $0x10] sm:$0xff] }
  0xbd   :  { %704 = vmatpush3.bf16.msra.mxu0 %v180_v7  ;;  %v802_v37 = vpack.c.bf16 %v293_v34, %v292_v33  ;;  %v295_v38 = vld [vmem:[#allocation10 + $0x18] sm:$0xff]  ;;  %v276_v39 = vld [vmem:[#allocation8] sm:$0xff]  ;;  %v277_v40 = vld [vmem:[#allocation8 + $0x8] sm:$0xff]  ;;  %p1099_p13 = por %p1098_p12, %p1097_p11 }
  0xbe   :  { %705 = vmatprep.subr.bf16.mxu0 %v1140_v0  ;;  %v805_v41 = vpack.c.bf16 %v295_v38, %v294_v35  ;;  %v826_v42 = vpack.c.bf16 %v277_v40, %v276_v39  ;;  %v278_v43 = vld [vmem:[#allocation8 + $0x10] sm:$0xff]  ;;  %v279_v44 = vld [vmem:[#allocation8 + $0x18] sm:$0xff]  ;;  %v296_v45 = vld [vmem:[#allocation10 + $0x20] sm:$0xff] }
  0xbf   :  { %255 = vperm.xlu0 %867, %v253_v16   ;;  %803 = vmatpush3.bf16.msra.mxu1 %v802_v37  ;;  %v297_v46 = vld [vmem:[#allocation10 + $0x28] sm:$0xff]  ;;  %v829_v47 = vpack.c.bf16 %v279_v44, %v278_v43  ;;  %v280_v48 = vld [vmem:[#allocation8 + $0x20] sm:$0xff]  ;;  %v298_v51 = vld [vmem:[#allocation10 + $0x30] sm:$0xff]  ;;  %p1100_p0 = pnand %p1099_p13, %p1093_p10 }
  0xc0   :  { %804 = vmatprep.subr.bf16.mxu1 %v1144_v36  ;;  %v281_v49 = vld [vmem:[#allocation8 + $0x28] sm:$0xff]  ;;  %v808_v50 = vpack.c.bf16 %v297_v46, %v296_v45  ;;  %v299_v52 = vld [vmem:[#allocation10 + $0x38] sm:$0xff]  ;;  %v282_v54 = vld [vmem:[#allocation8 + $0x30] sm:$0xff] }
  0xc1   :  { %706 = vmatpush3.bf16.msra.mxu0 %v181_v12  ;;  %v832_v53 = vpack.c.bf16 %v281_v49, %v280_v48  ;;  %v283_v55 = vld [vmem:[#allocation8 + $0x38] sm:$0xff]  ;;  %v811_v56 = vpack.c.bf16 %v299_v52, %v298_v51  ;;  %v300_v57 = vld [vmem:[#allocation10 + $0x40] sm:$0xff]  ;;  %v301_v58 = vld [vmem:[#allocation10 + $0x48] sm:$0xff] }
  0xc2   :  { %707 = vmatprep.subr.bf16.mxu0 %v1140_v0  ;;  %v835_v59 = vpack.c.bf16 %v283_v55, %v282_v54  ;;  %v284_v60 = vld [vmem:[#allocation8 + $0x40] sm:$0xff]  ;;  %v285_v61 = vld [vmem:[#allocation8 + $0x48] sm:$0xff]  ;;  %v814_v62 = vpack.c.bf16 %v301_v58, %v300_v57  ;;  %v302_v63 = vld [vmem:[#allocation10 + $0x50] sm:$0xff] }
  0xc3   :  { %869 = vset.pattern.permute.xlu0 %v1143_v32  ;;  %806 = vmatpush3.bf16.msra.mxu1 %v805_v41  ;;  %v303_v4 = vld [vmem:[#allocation10 + $0x58] sm:$0xff]  ;;  %v838_v5 = vpack.c.bf16 %v285_v61, %v284_v60  ;;  %v304_v7 = vld [vmem:[#allocation10 + $0x60] sm:$0xff]  ;;  %v305_v8 = vld [vmem:[#allocation10 + $0x68] sm:$0xff] }
  0xc4   :  { %807 = vmatprep.subr.bf16.mxu1 %v1144_v36  ;;  %v817_v6 = vpack.c.bf16 %v303_v4, %v302_v63  ;;  %v820_v9 = vpack.c.bf16 %v305_v8, %v304_v7  ;;  %v306_v14 = vld [vmem:[#allocation10 + $0x70] sm:$0xff]  ;;  %v307_v15 = vld [vmem:[#allocation10 + $0x78] sm:$0xff]  ;;  %v288_v22 = vld [vmem:[#allocation8 + $0x60] sm:$0xff] }
  0xc5   :  { %708 = vmatpush3.bf16.msra.mxu0 %v182_v17  ;;  %v286_v16 = vld [vmem:[#allocation8 + $0x50] sm:$0xff]  ;;  %v823_v18 = vpack.c.bf16 %v307_v15, %v306_v14  ;;  %v287_v19 = vld [vmem:[#allocation8 + $0x58] sm:$0xff]  ;;  %v648_v51 = vld [vmem:[#allocation11] ss:$0 sm:$0xff] }
  0xc6   :  { %709 = vmatprep.subr.bf16.mxu0 %v1140_v0  ;;  %v290_v25 = vld [vmem:[#allocation8 + $0x70] sm:$0xff]  ;;  %v649_v57 = vld [vmem:[#allocation14] ss:$0 sm:$0xff] }
  0xc7   :  { %809 = vmatpush3.bf16.msra.mxu1 %v808_v50 }
  0xc8   :  { %810 = vmatprep.subr.bf16.mxu1 %v1144_v36 }
  0xc9   :  { %710 = vmatpush3.bf16.msra.mxu0 %v183_v20  ;;  %v841_v20 = vpack.c.bf16 %v287_v19, %v286_v16 }
  0xca   :  { %711 = vmatprep.subr.bf16.mxu0 %v1140_v0 }
  0xcb   :  { %812 = vmatpush3.bf16.msra.mxu1 %v811_v56  ;;  %v540_v56 = vld [vmem:[#allocation16] sm:$0xf] }
  0xcc   :  { %813 = vmatprep.subr.bf16.mxu1 %v1144_v36 }
  0xcd   :  { %712 = vmatpush3.bf16.msra.mxu0 %v184_v23  ;;  %v289_v23 = vld [vmem:[#allocation8 + $0x68] sm:$0xff] }
  0xce   :  { %713 = vmatprep.subr.bf16.mxu0 %v1140_v0  ;;  %v844_v24 = vpack.c.bf16 %v289_v23, %v288_v22 }
  0xcf   :  { %815 = vmatpush3.bf16.msra.mxu1 %v814_v62  ;;  %v651_v62 = vld [vmem:[#allocation17] ss:$0 sm:$0xff] }
  0xd0   :  { %816 = vmatprep.subr.bf16.mxu1 %v1144_v36 }
  0xd1   :  { %714 = vmatpush3.bf16.msra.mxu0 %v185_v26  ;;  %v291_v26 = vld [vmem:[#allocation8 + $0x78] sm:$0xff] }
  0xd2   :  { %715 = vmatprep.subr.bf16.mxu0 %v1140_v0  ;;  %v847_v27 = vpack.c.bf16 %v291_v26, %v290_v25 }
  0xd3   :  { %818 = vmatpush3.bf16.msra.mxu1 %v817_v6 }
  0xd4   :  { %819 = vmatprep.subr.bf16.mxu1 %v1144_v36 }
  0xd5   :  { %716 = vmatpush3.bf16.msra.mxu0 %v186_v29 }
  0xd6   :  { %825 = vmatprep.subr.bf16.mxu0 %v1144_v36 }
  0xd7   :  { %821 = vmatpush3.bf16.msra.mxu1 %v820_v9 }
  0xd8   :  { %718 = vmatmul.mubr.bf16.vlgmr.msra.gmra.mrb[0].mxu0 %v162_v31  ;;  %822 = vmatprep.subr.bf16.mxu1 %v1144_v36 }
  0xd9   :  { %788 = vmatprep.mubr.msk.f32.mxu0 %vm1141_vm0, %v1140_v0  ;;  %827 = vmatpush3.bf16.msra.mxu0 %v826_v42 }
  0xda   :  { %828 = vmatprep.subr.bf16.mxu0 %v1144_v36 }
  0xdb   :  { %824 = vmatpush3.bf16.msra.mxu1 %v823_v18 }
  0xdc   :  { %791 = vmatprep.subr.mxu1 %v1140_v0 }
  0xdd   :  { %830 = vmatpush3.bf16.msra.mxu0 %v829_v47  ;;  %v457_v47 = vld [vmem:[#allocation13] sm:$0xff] }
  0xde   :  { %831 = vmatprep.subr.bf16.mxu0 %v1144_v36 }
  0xe1   :  { %833 = vmatpush3.bf16.msra.mxu0 %v832_v53 }
  0xe2   :  { %834 = vmatprep.subr.bf16.mxu0 %v1144_v36 }
  0xe5   :  { %836 = vmatpush3.bf16.msra.mxu0 %v835_v59 }
  0xe6   :  { %837 = vmatprep.subr.bf16.mxu0 %v1144_v36 }
  0xe9   :  { %839 = vmatpush3.bf16.msra.mxu0 %v838_v5 }
  0xea   :  { %840 = vmatprep.subr.bf16.mxu0 %v1144_v36 }
  0xed   :  { %842 = vmatpush3.bf16.msra.mxu0 %v841_v20 }
  0xee   :  { %843 = vmatprep.subr.bf16.mxu0 %v1144_v36 }
  0xf1   :  { %845 = vmatpush3.bf16.msra.mxu0 %v844_v24 }
  0xf2   :  { %846 = vmatprep.subr.bf16.mxu0 %v1144_v36 }
  0xf5   :  { %848 = vmatpush3.bf16.msra.mxu0 %v847_v27 }
 0x13a   :  { %v241_v28 = vpop.permute.xlu0 %240 }
 0x13b   :  { %vm242_vm4 = vcmp.eq.s32.totalorder %v241_v28, 1 }
 0x13e   :  { %v256_v29 = vpop.permute.xlu0 %255 }
 0x13f   :  { %vm257_vm5 = vcmp.eq.s32.totalorder %v256_v29, 1 }
 0x140   :  { %v258_v30 = vsel %vm257_vm5, %v1341_v3, -3e+38 }
 0x141   :  { %v259_v32 = vrot.slane %v258_v30, 4 }
 0x143   :  { %v260_v34 = vmax.f32 %v258_v30, %v259_v32 }
 0x145   :  { %v261_v37 = vrot.slane %v260_v34, 2 }
 0x147   :  { %v262_v39 = vmax.f32 %v260_v34, %v261_v37 }
 0x149   :  { %v263_v41 = vrot.slane %v262_v39, 1 }
 0x14b   :  { %v264_v42 = vmax.f32 %v262_v39, %v263_v41 }
 0x1ab   :  { %v221_v10 = vpop.f32.mrb[0].mxu0 }
 0x1ac   :  { %v719_v11 = vpop.f32.mrb[1].mxu0  ;;  %v227_v12 = vmax.f32 %v221_v10, 1.0  ;;  %vm269_vm3 = vcmp.gt.f32.partialorder %v221_v10, 0.0 }
 0x1ad   :  { %v224_v13 = vpop.f32.mrb[2].mxu0  ;;  %v270_v21 = vsel %vm269_vm3, 1, %v1142_v1  ;;  %v243_v1 = vsel %vm242_vm4, %v1339_v2, -3e+38 }
 0x1ae   :  { %230 = vperm.xlu1 %868, %v227_v12   ;;  %v720_v17 = vpop.f32.mrb[3].mxu0  ;;  %v244_v31 = vrot.slane %v243_v1, 4 }
 0x1b0   :  { %v245_v33 = vmax.f32 %v243_v1, %v244_v31 }
 0x1b2   :  { %272 = vperm.xlu1 %868, %v270_v21   ;;  %v246_v35 = vrot.slane %v245_v33, 2 }
 0x1b4   :  { %v247_v38 = vmax.f32 %v245_v33, %v246_v35 }
 0x1b6   :  { %v248_v40 = vrot.slane %v247_v38, 1 }
 0x1b8   :  { %v249_v36 = vmax.f32 %v247_v38, %v248_v40 }
 0x1ba   :  { %v266_v44 = vsel %vm265_vm6, %v249_v36, %v264_v42 }
 0x1bb   :  { %v268_v3 = vsel %vm267_vm7, %v266_v44, 0.0 }
 0x22d   :  { %v231_v43 = vpop.permute.xlu1 %230 }
 0x22e   :  { %870 = vrcp.f32 %v231_v43 }
 0x231   :  { %v273_v2 = vpop.permute.xlu1 %272 }
 0x232   :  { %vm274_vm8 = vcmp.eq.s32.totalorder %v273_v2, 1 }
 0x233   :  { %754 = vmatmul.mubr.msk.f32.vlgmr.msra.gmra.mrb[0].mxu1 %vm274_vm8, %v268_v3 }
 0x234   :  { %793 = vmatprep.mubr.msk.f32.mxu1 %vm1141_vm0, %v1140_v0  ;;  %792 = vmatpush3.msra.mxu1 %v457_v47 }
 0x235   :  { %796 = vmatprep.subr.mxu1 %v1140_v0 }
 0x238   :  { %v871_v45 = vpop.eup %870 }
 0x239   :  { %v234_v46 = vmul.f32 %v871_v45, %v221_v10 }
 0x23b   :  { %789 = vmatmul.mubr.f32.vlgmr.msra.gmra.mrb[4].mxu0 %v234_v46 }
 0x306   :  { %v374_v48 = vpop.f32.mrb[0].mxu1 }
 0x307   :  { %v755_v49 = vpop.f32.mrb[1].mxu1 }
 0x30e   :  { %v444_v50 = vpop.f32.mrb[4].mxu0 }
 0x30f   :  { %v445_v52 = vadd.f32 %v444_v50, %v374_v48  ;;  %v790_v53 = vpop.f32.mrb[5].mxu0 }
 0x311   :  { %v455_v54 = vadd.f32 %v648_v51, %v445_v52 }
 0x313   :  { %v456_v55 = vmax.f32 %v455_v54, 0.0 }
 0x315   :  { %794 = vmatmul.mubr.msk.f32.vlgmr.msra.gmra.mrb[2].mxu1 %vm465_vm9, %v456_v55 }
 0x316   :  { %798 = vmatprep.mubr.msk.f32.mxu1 %vm1141_vm0, %v1140_v0  ;;  %797 = vmatpush3.msk.msra.mxu1 %vm552_vm10, %v540_v56 }
 0x3e8   :  { %v535_v58 = vpop.f32.mrb[2].mxu1 }
 0x3e9   :  { %v536_v59 = vadd.f32 %v649_v57, %v535_v58  ;;  %v795_v60 = vpop.f32.mrb[3].mxu1 }
 0x3eb   :  { %v539_v61 = vmax.f32 %v536_v59, 0.0 }
 0x3ed   :  { %799 = vmatmul.mubr.msk.f32.vlgmr.msra.gmra.mrb[4].mxu1 %vm548_vm11, %v539_v61 }
 0x4c0   :  { %v622_v63 = vpop.f32.mrb[4].mxu1 }
 0x4c1   :  { %v623_v4 = vadd.f32 %v651_v62, %v622_v63  ;;  %v800_v5 = vpop.f32.mrb[5].mxu1 }
 0x4c3   :  { %626 = vst [vmem:[#allocation19] sm:$0xff] %v623_v4 }
 0x4c4   :  { %1103 = shalt.err (!%p1100_p0)
}
 0x4c5   :  { %s1104_s14 = scalar_lea.hbm %s1403_s10, 128 }
 0x4c6   :  { %p1105_p1 = scmp.ne.s32.totalorder %s1403_s10, %s1104_s14  ;;  %p1108_p2 = scmp.lt.u32.totalorder %s1104_s14, %s1403_s10 }
 0x4c8   :  { %p1110_p3 = pnand %p1108_p2, %p1105_p1 }
 0x4ca   :  { %1113 = shalt.err (!%p1110_p3)
}
 0x4cb   :  { %636 = dma.vmem_to_hbm [thread:$0]  %s634_s23, 128, %s1403_s10, [#allocation4]  }
 0x4cc   :  { %1126 = dma.done.wait [#allocation4], 128  }
 0x4cd   :  { %1127 = vsyncadd [#allocation4], 4294967168 }
 0x4ce   :  { %640 = vsyncpa [#allocation3], 1 }
 0x4cf   :  { %641 = vsyncpa [#allocation6], 1 }
 0x4d0   :  { %642 = vsyncpa [#allocation9], 1 }
 0x4d1   :  { %643 = vsyncpa [#allocation12], 1 }
 0x4d2   :  { %644 = vsyncpa [#allocation15], 1 }
 0x4d3   :  { %645 = vsyncpa [#allocation18], 1 }
 0x4d4   :  { %646 = vsyncpa [#allocation4], 1 }

// kernel: model_a_forward.2
= control target key start
LH: loop header
LB: loop body
LE: loop exit
PB: predicated region body
PF: predicated region fallthrough
CT: control target
= control target key end

     0   :  { %s3906_s0 = inlined_call_operand.hbm [shape: bf16[128,128], index: 0, kind: input, shape index: {}]   ;;  %s3907_s1 = inlined_call_operand.hbm [shape: f32[128,4], index: 1, kind: input, shape index: {}]   ;;  %s3908_s2 = inlined_call_operand.hbm [shape: f32[4,8], index: 2, kind: input, shape index: {}]   ;;  %s3909_s3 = inlined_call_operand.hbm [shape: f32[1,8], index: 3, kind: input, shape index: {}]   ;;  %s3910_s4 = inlined_call_operand.hbm [shape: f32[8,8], index: 4, kind: input, shape index: {}]   ;;  %s3911_s5 = inlined_call_operand.hbm [shape: f32[1,8], index: 5, kind: input, shape index: {}]   ;;  %s3912_s6 = inlined_call_operand.hbm [shape: f32[8,8], index: 6, kind: input, shape index: {}]   ;;  %s3913_s7 = inlined_call_operand.hbm [shape: f32[1,8], index: 7, kind: input, shape index: {}]   ;;  %s3914_s8 = inlined_call_operand.hbm [shape: f32[24,1], index: 8, kind: input, shape index: {}]   ;;  %s3915_s9 = inlined_call_operand.<no memory space> [shape: f32[1,1], index: 9, kind: input, shape index: {}]   ;;  %s3916_s10 = inlined_call_operand.hbm [shape: f32[128,128], index: 10, kind: output, shape index: {}]  }
   0x1   :  { %v15_v0 = vstv %s3915_s9 }
   0x2   :  { %16 = vst [vmem:[#allocation4] sm:$0x1] %v15_v0 }
   0x3   :  { %17 = vsyncpa [#allocation6], 0 }
   0x4   :  { %18 = vsyncpa [#allocation9], 0 }
   0x5   :  { %19 = vsyncpa [#allocation12], 0 }
   0x6   :  { %20 = vsyncpa [#allocation15], 0 }
   0x7   :  { %21 = vsyncpa [#allocation18], 0 }
   0x8   :  { %22 = vsyncpa [#allocation7], 0  ;;  %s3138_s15 = smov [#allocation8]   ;;  %s3139_s17 = smov [#allocation11]  }
   0x9   :  { %s41_s16 = sshll.u32 %s3138_s15, 4  ;;  %s61_s18 = sshll.u32 %s3139_s17, 4  ;;  %s42_s16 = int_to_ptr.vmem [resolvable:$true] %s41_s16  ;;  %s62_s18 = int_to_ptr.vmem [resolvable:$true] %s61_s18 }
   0xa   :  { %s2877_s21 = scalar_lea.hbm %s3908_s2, 64 }
   0xb   :  { %p2878_p0 = scmp.ne.s32.totalorder %s3908_s2, %s2877_s21  ;;  %p2881_p1 = scmp.lt.u32.totalorder %s2877_s21, %s3908_s2 }
   0xd   :  { %p2883_p2 = pnand %p2881_p1, %p2878_p0 }
   0xf   :  { %2886 = shalt.err (!%p2883_p2)
}
  0x10   :  { %s2887_s25 = scalar_lea.vmem %s42_s16, 64  ;;  %p2892_p4 = scmp.lt.s32.totalorder %s42_s16, %s42_s16 }
  0x11   :  { %p2888_p3 = scmp.ne.s32.totalorder %s42_s16, %s2887_s25  ;;  %p2893_p5 = scmp.lt.s32.totalorder %s2887_s25, %s2887_s25 }
  0x13   :  { %p2894_p6 = por %p2893_p5, %p2892_p4 }
  0x15   :  { %p2895_p7 = pnand %p2894_p6, %p2888_p3 }
  0x17   :  { %2898 = shalt.err (!%p2895_p7)
}
  0x18   :  { %44 = dma.hbm_to_vmem [thread:$0]  %s3908_s2, 64, %s42_s16, [#allocation9]  }
  0x19   :  { %s2899_s30 = scalar_lea.hbm %s3910_s4, 128 }
  0x1a   :  { %p2900_p8 = scmp.ne.s32.totalorder %s3910_s4, %s2899_s30  ;;  %p2903_p9 = scmp.lt.u32.totalorder %s2899_s30, %s3910_s4 }
  0x1c   :  { %p2905_p10 = pnand %p2903_p9, %p2900_p8 }
  0x1e   :  { %2908 = shalt.err (!%p2905_p10)
}
  0x1f   :  { %s2909_s15 = scalar_lea.vmem %s62_s18, 128  ;;  %p2914_p12 = scmp.lt.s32.totalorder %s62_s18, %s62_s18 }
  0x20   :  { %p2910_p11 = scmp.ne.s32.totalorder %s62_s18, %s2909_s15  ;;  %p2915_p13 = scmp.lt.s32.totalorder %s2909_s15, %s2909_s15 }
  0x22   :  { %p2916_p0 = por %p2915_p13, %p2914_p12 }
  0x24   :  { %p2917_p1 = pnand %p2916_p0, %p2910_p11 }
  0x26   :  { %2920 = shalt.err (!%p2917_p1)
}
  0x27   :  { %64 = dma.hbm_to_vmem [thread:$0]  %s3910_s4, 128, %s62_s18, [#allocation12]  }
  0x28   :  { %s3140_s17 = smov [#allocation14]   ;;  %s3141_s20 = smov [#allocation5]  }
  0x29   :  { %s81_s19 = sshll.u32 %s3140_s17, 4  ;;  %s28_s21 = sshll.u32 %s3141_s20, 4  ;;  %s82_s19 = int_to_ptr.vmem [resolvable:$true] %s81_s19  ;;  %s3236_s21 = int_to_ptr.vmem [resolvable:$true] %s28_s21 }
  0x2a   :  { %s2921_s9 = scalar_lea.hbm %s3912_s6, 128 }
  0x2b   :  { %p2922_p2 = scmp.ne.s32.totalorder %s3912_s6, %s2921_s9  ;;  %p2925_p3 = scmp.lt.u32.totalorder %s2921_s9, %s3912_s6 }
  0x2d   :  { %p2927_p4 = pnand %p2925_p3, %p2922_p2 }
  0x2f   :  { %2930 = shalt.err (!%p2927_p4)
}
  0x30   :  { %s2931_s4 = scalar_lea.vmem %s82_s19, 128  ;;  %p2936_p6 = scmp.lt.s32.totalorder %s82_s19, %s82_s19 }
  0x31   :  { %p2932_p5 = scmp.ne.s32.totalorder %s82_s19, %s2931_s4  ;;  %p2937_p7 = scmp.lt.s32.totalorder %s2931_s4, %s2931_s4 }
  0x33   :  { %p2938_p8 = por %p2937_p7, %p2936_p6 }
  0x35   :  { %p2939_p9 = pnand %p2938_p8, %p2932_p5 }
  0x37   :  { %2942 = shalt.err (!%p2939_p9)
}
  0x38   :  { %84 = dma.hbm_to_vmem [thread:$0]  %s3912_s6, 128, %s82_s19, [#allocation15]  }
  0x39   :  { %s2943_s11 = scalar_lea.hbm %s3907_s1, 2048 }
  0x3a   :  { %p2944_p10 = scmp.ne.s32.totalorder %s3907_s1, %s2943_s11  ;;  %p2947_p11 = scmp.lt.u32.totalorder %s2943_s11, %s3907_s1 }
  0x3c   :  { %p2949_p12 = pnand %p2947_p11, %p2944_p10 }
  0x3e   :  { %2952 = shalt.err (!%p2949_p12)
}
  0x3f   :  { %s2953_s2 = scalar_lea.vmem %s3236_s21, 2048  ;;  %p2958_p0 = scmp.lt.s32.totalorder %s3236_s21, %s3236_s21 }
  0x40   :  { %p2954_p13 = scmp.ne.s32.totalorder %s3236_s21, %s2953_s2  ;;  %p2959_p1 = scmp.lt.s32.totalorder %s2953_s2, %s2953_s2 }
  0x42   :  { %p2960_p2 = por %p2959_p1, %p2958_p0 }
  0x44   :  { %p2961_p3 = pnand %p2960_p2, %p2954_p13 }
  0x46   :  { %2964 = shalt.err (!%p2961_p3)
}
  0x47   :  { %s3142_s6 = smov 128   ;;  %s3143_s16 = smov 8  }
  0x48   :  { %34 = dma.hbm_to_vmem [thread:$0]  %s3907_s1, 2048, %s3236_s21, [#allocation6], %s3142_s6, %s3142_s6, %s3143_s16  }
  0x49   :  { %s3144_s20 = smov [#allocation10]   ;;  %s3145_s23 = smov [#allocation13]  }
  0x4a   :  { %s51_s22 = sshll.u32 %s3144_s20, 4  ;;  %s71_s9 = sshll.u32 %s3145_s23, 4  ;;  %s52_s22 = int_to_ptr.vmem [resolvable:$true] %s51_s22  ;;  %s72_s9 = int_to_ptr.vmem [resolvable:$true] %s71_s9 }
  0x4b   :  { %s2965_s26 = scalar_lea.hbm %s3909_s3, 16 }
  0x4c   :  { %p2966_p4 = scmp.ne.s32.totalorder %s3909_s3, %s2965_s26  ;;  %p2969_p5 = scmp.lt.u32.totalorder %s2965_s26, %s3909_s3 }
  0x4e   :  { %p2971_p6 = pnand %p2969_p5, %p2966_p4 }
  0x50   :  { %2974 = shalt.err (!%p2971_p6)
}
  0x51   :  { %s2975_s1 = scalar_lea.vmem %s52_s22, 16  ;;  %s2979_s21 = scalar_lea.vmem %s52_s22, 32 }
  0x52   :  { %p2976_p7 = scmp.ne.s32.totalorder %s52_s22, %s2975_s1  ;;  %p2980_p8 = scmp.lt.s32.totalorder %s52_s22, %s52_s22 }
  0x53   :  { %p2981_p9 = scmp.lt.s32.totalorder %s2979_s21, %s2975_s1 }
  0x55   :  { %p2982_p10 = por %p2981_p9, %p2980_p8 }
  0x57   :  { %p2983_p11 = pnand %p2982_p10, %p2976_p7 }
  0x59   :  { %2986 = shalt.err (!%p2983_p11)
}
  0x5a   :  { %54 = dma.hbm_to_vmem [thread:$0]  %s3909_s3, 16, %s52_s22, [#allocation9]  }
  0x5b   :  { %s2987_s13 = scalar_lea.hbm %s3911_s5, 16 }
  0x5c   :  { %p2988_p12 = scmp.ne.s32.totalorder %s3911_s5, %s2987_s13  ;;  %p2991_p13 = scmp.lt.u32.totalorder %s2987_s13, %s3911_s5 }
  0x5e   :  { %p2993_p0 = pnand %p2991_p13, %p2988_p12 }
  0x60   :  { %2996 = shalt.err (!%p2993_p0)
}
  0x61   :  { %s2997_s19 = scalar_lea.vmem %s72_s9, 16  ;;  %s3001_s20 = scalar_lea.vmem %s72_s9, 32 }
  0x62   :  { %p2998_p1 = scmp.ne.s32.totalorder %s72_s9, %s2997_s19  ;;  %p3002_p2 = scmp.lt.s32.totalorder %s72_s9, %s72_s9 }
  0x63   :  { %p3003_p3 = scmp.lt.s32.totalorder %s3001_s20, %s2997_s19 }
  0x65   :  { %p3004_p4 = por %p3003_p3, %p3002_p2 }
  0x67   :  { %p3005_p5 = pnand %p3004_p4, %p2998_p1 }
  0x69   :  { %3008 = shalt.err (!%p3005_p5)
}
  0x6a   :  { %74 = dma.hbm_to_vmem [thread:$0]  %s3911_s5, 16, %s72_s9, [#allocation12]  }
  0x6b   :  { %s3146_s23 = smov [#allocation16]   ;;  %s3147_s25 = smov [#allocation17]  }
  0x6c   :  { %s91_s24 = sshll.u32 %s3146_s23, 4  ;;  %s100_s26 = sshll.u32 %s3147_s25, 4  ;;  %s92_s24 = int_to_ptr.vmem [resolvable:$true] %s91_s24  ;;  %s3294_s26 = int_to_ptr.vmem [resolvable:$true] %s100_s26 }
  0x6d   :  { %s3009_s18 = scalar_lea.hbm %s3913_s7, 16 }
  0x6e   :  { %p3010_p6 = scmp.ne.s32.totalorder %s3913_s7, %s3009_s18  ;;  %p3013_p7 = scmp.lt.u32.totalorder %s3009_s18, %s3913_s7 }
  0x70   :  { %p3015_p8 = pnand %p3013_p7, %p3010_p6 }
  0x72   :  { %3018 = shalt.err (!%p3015_p8)
}
  0x73   :  { %s3019_s5 = scalar_lea.vmem %s92_s24, 16  ;;  %s3023_s9 = scalar_lea.vmem %s92_s24, 32 }
  0x74   :  { %p3020_p9 = scmp.ne.s32.totalorder %s92_s24, %s3019_s5  ;;  %p3024_p10 = scmp.lt.s32.totalorder %s92_s24, %s92_s24 }
  0x75   :  { %p3025_p11 = scmp.lt.s32.totalorder %s3023_s9, %s3019_s5 }
  0x77   :  { %p3026_p12 = por %p3025_p11, %p3024_p10 }
  0x79   :  { %p3027_p13 = pnand %p3026_p12, %p3020_p9 }
  0x7b   :  { %3030 = shalt.err (!%p3027_p13)
}
  0x7c   :  { %94 = dma.hbm_to_vmem [thread:$0]  %s3913_s7, 16, %s92_s24, [#allocation15]  }
  0x7d   :  { %s3031_s14 = scalar_lea.hbm %s3914_s8, 384 }
  0x7e   :  { %p3032_p0 = scmp.ne.s32.totalorder %s3914_s8, %s3031_s14  ;;  %p3035_p1 = scmp.lt.u32.totalorder %s3031_s14, %s3914_s8 }
  0x80   :  { %p3037_p2 = pnand %p3035_p1, %p3032_p0 }
  0x82   :  { %3040 = shalt.err (!%p3037_p2)
}
  0x83   :  { %s3041_s20 = scalar_lea.vmem %s3294_s26, 384  ;;  %p3046_p4 = scmp.lt.s32.totalorder %s3294_s26, %s3294_s26 }
  0x84   :  { %p3042_p3 = scmp.ne.s32.totalorder %s3294_s26, %s3041_s20  ;;  %p3047_p5 = scmp.lt.s32.totalorder %s3041_s20, %s3041_s20 }
  0x86   :  { %p3048_p6 = por %p3047_p5, %p3046_p4 }
  0x88   :  { %p3049_p7 = pnand %p3048_p6, %p3042_p3 }
  0x8a   :  { %3052 = shalt.err (!%p3049_p7)
}
  0x8b   :  { %106 = dma.hbm_to_vmem [thread:$0]  %s3914_s8, 384, %s3294_s26, [#allocation18], %s3142_s6, %s3142_s6, %s3143_s16  }
  0x8c   :  { %3122 = dma.done.wait [#allocation6], 2048  }
  0x8d   :  { %3123 = vsyncadd [#allocation6], 4294965248 }
  0x8e   :  { %3124 = dma.done.wait [#allocation9], 80  }
  0x8f   :  { %3125 = vsyncadd [#allocation9], 4294967216 }
  0x90   :  { %3126 = dma.done.wait [#allocation12], 144  }
  0x91   :  { %3127 = vsyncadd [#allocation12], 4294967152 }
  0x92   :  { %3128 = dma.done.wait [#allocation15], 144  }
  0x93   :  { %3129 = vsyncadd [#allocation15], 4294967152 }
  0x94   :  { %3130 = dma.done.wait [#allocation18], 384  }
  0x95   :  { %3131 = vsyncadd [#allocation18], 4294966912  ;;  %vm225_vm0 = vcmask 1043456   ;;  %vm176_vm1 = vcmask 31744   ;;  %v175_v1 = vld [vmem:[#allocation8] sm:$0xf] }
  0x96   :  { %v159_v2 = vld [vmem:[#allocation5] sm:$0xff]  ;;  %v160_v3 = vld [vmem:[#allocation5 + $0x8] sm:$0xff]  ;;  %2495 = vmatprep.subr.msk.mxu0 %vm225_vm0, %v175_v1  ;;  %v161_v4 = vld [vmem:[#allocation5 + $0x10] sm:$0xff]  ;;  %s3148_s8 = smov [#allocation2]   ;;  %s3149_s23 = smov [#allocation2 + $0x20]  }
  0x97   :  { %2497 = vmatprep.mubr.msk.f32.mxu0 %vm176_vm1, %v159_v2  ;;  %2496 = vmatpush3.msk.msra.mxu0 %vm225_vm0, %v175_v1  ;;  %v162_v5 = vld [vmem:[#allocation5 + $0x18] sm:$0xff]  ;;  %v163_v6 = vld [vmem:[#allocation5 + $0x20] sm:$0xff]  ;;  %v164_v7 = vld [vmem:[#allocation5 + $0x28] sm:$0xff]  ;;  %s141_s22 = sshll.u32 %s3148_s8, 4  ;;  %s155_s24 = sshll.u32 %s3149_s23, 4  ;;  %s3344_s22 = int_to_ptr.vmem [resolvable:$true] %s141_s22  ;;  %s156_s24 = int_to_ptr.vmem [resolvable:$true] %s155_s24 }
  0x98   :  { %2498 = vmatmul.mubr.msk.f32.vlgmr.msra.gmra.mrb[0].mxu0 %vm176_vm1, %v160_v3  ;;  %v165_v8 = vld [vmem:[#allocation5 + $0x30] sm:$0xff]  ;;  %v166_v9 = vld [vmem:[#allocation5 + $0x38] sm:$0xff]  ;;  %v167_v10 = vld [vmem:[#allocation5 + $0x40] sm:$0xff]  ;;  %s3349_s27 = scalar_lea.hbm %s3906_s0, 512  ;;  %s3055_s21 = scalar_lea.hbm %s3906_s0, 1024 }
  0x99   :  { %2500 = vmatprep.mubr.msk.f32.mxu0 %vm176_vm1, %v161_v4  ;;  %v168_v11 = vld [vmem:[#allocation5 + $0x48] sm:$0xff]  ;;  %v169_v12 = vld [vmem:[#allocation5 + $0x50] sm:$0xff]  ;;  %v170_v13 = vld [vmem:[#allocation5 + $0x58] sm:$0xff]  ;;  %p3054_p8 = scmp.ne.s32.totalorder %s3906_s0, %s3349_s27  ;;  %p3056_p9 = scmp.lt.u32.totalorder %s3055_s21, %s3349_s27 }
  0x9a   :  { %v171_v14 = vld [vmem:[#allocation5 + $0x60] sm:$0xff]  ;;  %v172_v15 = vld [vmem:[#allocation5 + $0x68] sm:$0xff]  ;;  %v173_v16 = vld [vmem:[#allocation5 + $0x70] sm:$0xff]  ;;  %p3057_p10 = scmp.lt.u32.totalorder %s3349_s27, %s3906_s0 }
  0x9b   :  { %v174_v17 = vld [vmem:[#allocation5 + $0x78] sm:$0xff] }
  0x9c   :  { %2501 = vmatmul.mubr.msk.f32.gmra.mrb[2].mxu0 %vm176_vm1, %v162_v5  ;;  %p3058_p11 = por %p3057_p10, %p3056_p9 }
  0x9d   :  { %2503 = vmatprep.mubr.msk.f32.mxu0 %vm176_vm1, %v163_v6 }
  0x9e   :  { %p3059_p12 = pnand %p3058_p11, %p3054_p8 }
  0xa0   :  { %2504 = vmatmul.mubr.msk.f32.gmra.mrb[4].mxu0 %vm176_vm1, %v164_v7 }
  0xa1   :  { %2506 = vmatprep.mubr.msk.f32.mxu0 %vm176_vm1, %v165_v8 }
  0xa4   :  { %2507 = vmatmul.mubr.msk.f32.gmra.mrb[6].mxu0 %vm176_vm1, %v166_v9 }
  0xa5   :  { %2509 = vmatprep.mubr.msk.f32.mxu0 %vm176_vm1, %v167_v10 }
  0xa8   :  { %2510 = vmatmul.mubr.msk.f32.gmra.mrb[8].mxu0 %vm176_vm1, %v168_v11 }
  0xa9   :  { %2512 = vmatprep.mubr.msk.f32.mxu0 %vm176_vm1, %v169_v12 }
  0xac   :  { %2513 = vmatmul.mubr.msk.f32.gmra.mrb[10].mxu0 %vm176_vm1, %v170_v13 }
  0xad   :  { %2515 = vmatprep.mubr.msk.f32.mxu0 %vm176_vm1, %v171_v14 }
  0xb0   :  { %2516 = vmatmul.mubr.msk.f32.gmra.mrb[12].mxu0 %vm176_vm1, %v172_v15 }
  0xb1   :  { %2518 = vmatprep.mubr.msk.f32.mxu0 %vm176_vm1, %v173_v16 }
  0xb4   :  { %2519 = vmatmul.mubr.msk.f32.gmra.mrb[14].mxu0 %vm176_vm1, %v174_v17 }
  0xb5   :  { %3062 = shalt.err (!%p3059_p12)  }
  0xb6   :  { %s3063_s11 = scalar_lea.vmem %s3344_s22, 512  ;;  %s3067_s12 = scalar_lea.vmem %s3344_s22, 1024 }
  0xb7   :  { %p3064_p13 = scmp.ne.s32.totalorder %s3344_s22, %s3063_s11  ;;  %p3068_p0 = scmp.lt.s32.totalorder %s3344_s22, %s3344_s22 }
  0xb8   :  { %p3069_p1 = scmp.lt.s32.totalorder %s3067_s12, %s3063_s11 }
  0xba   :  { %p3070_p2 = por %p3069_p1, %p3068_p0 }
  0xbc   :  { %p3071_p3 = pnand %p3070_p2, %p3064_p13 }
  0xbe   :  { %3074 = shalt.err (!%p3071_p3)  }
  0xbf   :  { %144 = dma.hbm_to_vmem [thread:$0]  %s3906_s0, 512, %s3344_s22, [#allocation3] }
  0xc0   :  { %p3076_p4 = scmp.ne.s32.totalorder %s3349_s27, %s3055_s21  ;;  %p3079_p5 = scmp.lt.u32.totalorder %s3055_s21, %s3055_s21 }
  0xc2   :  { %p3080_p6 = por %p3079_p5, %p3057_p10 }
  0xc4   :  { %p3082_p7 = por %p3080_p6, %p3056_p9 }
  0xc6   :  { %p3083_p8 = pnand %p3082_p7, %p3076_p4 }
  0xc8   :  { %3086 = shalt.err (!%p3083_p8)  }
  0xc9   :  { %s3087_s17 = scalar_lea.vmem %s156_s24, 512  ;;  %p3092_p12 = scmp.lt.s32.totalorder %s156_s24, %s3344_s22 }
  0xca   :  { %p3088_p11 = scmp.ne.s32.totalorder %s156_s24, %s3087_s17  ;;  %p3093_p13 = scmp.lt.s32.totalorder %s3067_s12, %s3087_s17 }
  0xcc   :  { %p3094_p0 = por %p3093_p13, %p3092_p12 }
  0xce   :  { %p3095_p1 = pnand %p3094_p0, %p3088_p11 }
  0xd0   :  { %3098 = shalt.err (!%p3095_p1)  }
  0xd1   :  { %158 = dma.hbm_to_vmem [thread:$0]  %s3349_s27, 512, %s156_s24, [#allocation3 + $0x1] }
 0x16b   :  { %v2499_v18 = vpop.f32.mrb[0].mxu0 }
 0x16c   :  { %v295_v19 = vpop.f32.mrb[1].mxu0 }
 0x16d   :  { %v374_v20 = vpack.c.bf16 %v2499_v18, %v295_v19 }
 0x16f   :  { %v2502_v21 = vpop.f32.mrb[2].mxu0  ;;  %2521 = vmatprep.subr.bf16.mxu1 %v374_v20 }
 0x170   :  { %v305_v22 = vpop.f32.mrb[3].mxu0 }
 0x171   :  { %v375_v23 = vpack.c.bf16 %v2502_v21, %v305_v22 }
 0x173   :  { %v2505_v24 = vpop.f32.mrb[4].mxu0 }
 0x174   :  { %v315_v25 = vpop.f32.mrb[5].mxu0 }
 0x175   :  { %v376_v26 = vpack.c.bf16 %v2505_v24, %v315_v25 }
 0x177   :  { %v2508_v27 = vpop.f32.mrb[6].mxu0 }
 0x178   :  { %v325_v28 = vpop.f32.mrb[7].mxu0 }
 0x179   :  { %v377_v29 = vpack.c.bf16 %v2508_v27, %v325_v28 }
 0x17b   :  { %v2511_v30 = vpop.f32.mrb[8].mxu0 }
 0x17c   :  { %v335_v31 = vpop.f32.mrb[9].mxu0 }
 0x17d   :  { %v378_v32 = vpack.c.bf16 %v2511_v30, %v335_v31 }
 0x17f   :  { %v2514_v33 = vpop.f32.mrb[10].mxu0 }
 0x180   :  { %v345_v34 = vpop.f32.mrb[11].mxu0 }
 0x181   :  { %v379_v35 = vpack.c.bf16 %v2514_v33, %v345_v34 }
 0x183   :  { %v2517_v36 = vpop.f32.mrb[12].mxu0 }
 0x184   :  { %v355_v37 = vpop.f32.mrb[13].mxu0 }
 0x185   :  { %v380_v38 = vpack.c.bf16 %v2517_v36, %v355_v37 }
 0x187   :  { %v2520_v39 = vpop.f32.mrb[14].mxu0 }
 0x188   :  { %v365_v40 = vpop.f32.mrb[15].mxu0 }
 0x189   :  { %v381_v41 = vpack.c.bf16 %v2520_v39, %v365_v40 }
 0x18a   :  { %3132 = dma.done.wait [#allocation3], 512 }
 0x18b   :  { %3133 = vsyncadd [#allocation3], 4294966784  ;;  %2522 = vmatpush3.bf16.msra.mxu1 %v374_v20  ;;  %v386_v42 = vld [vmem:[#allocation2] sm:$0xff]  ;;  %v387_v43 = vld [vmem:[#allocation2 + $0x8] sm:$0xff]  ;;  %2545 = vmatprep.subr.bf16.mxu0 %v374_v20 }
 0x18c   :  { %2523 = vmatprep.subr.bf16.mxu1 %v375_v23  ;;  %2537 = vmatprep.mubr.bf16.mxu1 %v386_v42  ;;  %v388_v44 = vld [vmem:[#allocation2 + $0x10] sm:$0xff]  ;;  %v389_v45 = vld [vmem:[#allocation2 + $0x18] sm:$0xff] }
 0x18f   :  { %2524 = vmatpush3.bf16.msra.mxu1 %v375_v23 }
 0x190   :  { %2525 = vmatprep.subr.bf16.mxu1 %v376_v26 }
 0x193   :  { %2526 = vmatpush3.bf16.msra.mxu1 %v376_v26 }
 0x194   :  { %2527 = vmatprep.subr.bf16.mxu1 %v377_v29 }
 0x197   :  { %2528 = vmatpush3.bf16.msra.mxu1 %v377_v29 }
 0x198   :  { %2529 = vmatprep.subr.bf16.mxu1 %v378_v32 }
 0x19b   :  { %2530 = vmatpush3.bf16.msra.mxu1 %v378_v32 }
 0x19c   :  { %2531 = vmatprep.subr.bf16.mxu1 %v379_v35 }
 0x19f   :  { %2532 = vmatpush3.bf16.msra.mxu1 %v379_v35 }
 0x1a0   :  { %2533 = vmatprep.subr.bf16.mxu1 %v380_v38 }
 0x1a3   :  { %2534 = vmatpush3.bf16.msra.mxu1 %v380_v38 }
 0x1a4   :  { %2535 = vmatprep.subr.bf16.mxu1 %v381_v41 }
 0x1a7   :  { %2536 = vmatpush3.bf16.msra.mxu1 %v381_v41 }
 0x1aa   :  { %2538 = vmatmul.mubr.bf16.vlgmr.msra.gmra.mrb[0].mxu1 %v387_v43 }
 0x1ab   :  { %2541 = vmatprep.mubr.bf16.mxu1 %v388_v44 }
 0x1b2   :  { %2542 = vmatmul.mubr.bf16.gmra.mrb[4].mxu1 %v389_v45 }
 0x27d   :  { %v2539_v46 = vpop.f32.mrb[0].mxu1 }
 0x27e   :  { %v424_v47 = vpop.f32.mrb[1].mxu1 }
 0x27f   :  { %v2540_v48 = vpop.f32.mrb[2].mxu1 }
 0x280   :  { %v427_v49 = vpop.f32.mrb[3].mxu1 }
 0x285   :  { %v2543_v50 = vpop.f32.mrb[4].mxu1 }
 0x286   :  { %v440_v51 = vpop.f32.mrb[5].mxu1 }
 0x287   :  { %v2544_v52 = vpop.f32.mrb[6].mxu1 }
 0x288   :  { %v443_v53 = vpop.f32.mrb[7].mxu1 }
 0x289   :  { %3134 = dma.done.wait [#allocation3 + $0x1], 512 }
 0x28a   :  { %3135 = vsyncadd [#allocation3 + $0x1], 4294966784  ;;  %2546 = vmatpush3.bf16.msra.mxu0 %v374_v20  ;;  %v3389_v54 = vld [vmem:[#allocation2 + $0x20] sm:$0xff]  ;;  %v3392_v56 = vld [vmem:[#allocation2 + $0x28] sm:$0xff]  ;;  %vm570_vm2 = vcmask 64512   ;;  %s3150_s0 = smov 16  }
 0x28b   :  { %2547 = vmatprep.subr.bf16.mxu0 %v375_v23  ;;  %2561 = vmatprep.mubr.bf16.mxu0 %v3389_v54  ;;  %v569_v55 = vld [vmem:[#allocation11] sm:$0xff]  ;;  %v3394_v57 = vld [vmem:[#allocation2 + $0x30] sm:$0xff]  ;;  %v2235_v58 = vld [vmem:[#allocation10] ss:$0 sm:$0xff]  ;;  %vm1956_vm3 = vcmask 130048   ;;  %s3152_s19 = smov 24  }
 0x28c   :  { %v533_v59 = vadd.f32 %v2235_v58, %v424_v47  ;;  %v3398_v60 = vld [vmem:[#allocation2 + $0x38] sm:$0xff]  ;;  %v534_v62 = vadd.f32 %v2235_v58, %v427_v49  ;;  %v535_v63 = vadd.f32 %v2539_v46, %v2235_v58  ;;  %v536_v1 = vadd.f32 %v2540_v48, %v2235_v58  ;;  %v3465_v48 = vld [vmem:[#allocation2] sm:$0xff]  ;;  %s3153_s20 = smov [#allocation19]  }
 0x28d   :  { %v537_v3 = vadd.f32 %v2235_v58, %v440_v51  ;;  %v538_v5 = vadd.f32 %v2235_v58, %v443_v53  ;;  %v539_v8 = vadd.f32 %v2543_v50, %v2235_v58  ;;  %v540_v9 = vadd.f32 %v2544_v52, %v2235_v58  ;;  %s2189_s7 = sshll.u32 %s3153_s20, 4  ;;  %s2190_s7 = int_to_ptr.vmem [resolvable:$true] %s2189_s7 }
 0x28e   :  { %2548 = vmatpush3.bf16.msra.mxu0 %v375_v23  ;;  %v3400_v61 = vmax.f32 %v533_v59, 0.0  ;;  %v3405_v0 = vmax.f32 %v534_v62, 0.0  ;;  %v3407_v2 = vmax.f32 %v535_v63, 0.0  ;;  %v3411_v4 = vmax.f32 %v536_v1, 0.0  ;;  %s3100_s3 = scalar_lea.vmem %s2190_s7, 2048  ;;  %p3105_p10 = scmp.lt.s32.totalorder %s2190_s7, %s2190_s7 }
 0x28f   :  { %2549 = vmatprep.subr.bf16.mxu0 %v376_v26  ;;  %v3415_v6 = vmax.f32 %v537_v3, 0.0  ;;  %v3419_v7 = vmax.f32 %v538_v5, 0.0  ;;  %v3425_v10 = vmax.f32 %v539_v8, 0.0  ;;  %v3427_v11 = vmax.f32 %v540_v9, 0.0  ;;  %v3468_v5 = vld [vmem:[#allocation2 + $0x8] sm:$0xff]  ;;  %v3470_v8 = vld [vmem:[#allocation2 + $0x10] sm:$0xff]  ;;  %p3101_p9 = scmp.ne.s32.totalorder %s2190_s7, %s3100_s3  ;;  %p3106_p2 = scmp.lt.s32.totalorder %s3100_s3, %s3100_s3 }
 0x290   :  { %v3474_v9 = vld [vmem:[#allocation2 + $0x18] sm:$0xff]  ;;  %vm2117_vm4 = vcmask 195584   ;;  %vm2134_vm5 = vcmask 203776   ;;  %vm2151_vm6 = vcmask 211968  }
 0x291   :  { %p3107_p3 = por %p3106_p2, %p3105_p10 }
 0x292   :  { %2550 = vmatpush3.bf16.msra.mxu0 %v376_v26 }
 0x293   :  { %2551 = vmatprep.subr.bf16.mxu0 %v377_v29  ;;  %p3108_p4 = pnand %p3107_p3, %p3101_p9 }
 0x296   :  { %2552 = vmatpush3.bf16.msra.mxu0 %v377_v29 }
 0x297   :  { %2553 = vmatprep.subr.bf16.mxu0 %v378_v32 }
 0x29a   :  { %2554 = vmatpush3.bf16.msra.mxu0 %v378_v32 }
 0x29b   :  { %2555 = vmatprep.subr.bf16.mxu0 %v379_v35 }
 0x29e   :  { %2556 = vmatpush3.bf16.msra.mxu0 %v379_v35 }
 0x29f   :  { %2557 = vmatprep.subr.bf16.mxu0 %v380_v38 }
 0x2a2   :  { %2558 = vmatpush3.bf16.msra.mxu0 %v380_v38 }
 0x2a3   :  { %2559 = vmatprep.subr.bf16.mxu0 %v381_v41 }
 0x2a6   :  { %2560 = vmatpush3.bf16.msra.mxu0 %v381_v41 }
 0x2a7   :  { %2569 = vmatprep.subr.mxu0 %v569_v55 }
 0x2a9   :  { %2562 = vmatmul.mubr.bf16.vlgmr.msra.gmra.mrb[16].mxu0 %v3392_v56 }
 0x2aa   :  { %2565 = vmatprep.mubr.bf16.mxu0 %v3394_v57  ;;  %2570 = vmatpush3.msra.mxu0 %v569_v55 }
 0x2b1   :  { %2566 = vmatmul.mubr.bf16.gmra.mrb[20].mxu0 %v3398_v60 }
 0x2b2   :  { %2571 = vmatprep.mubr.msk.f32.mxu0 %vm570_vm2, %v3400_v61 }
 0x2b9   :  { %2572 = vmatmul.mubr.msk.f32.vlgmr.msra.gmra.mrb[24].mxu0 %vm570_vm2, %v3405_v0 }
 0x2ba   :  { %2574 = vmatprep.mubr.msk.f32.mxu0 %vm570_vm2, %v3407_v2 }
 0x2bd   :  { %2575 = vmatmul.mubr.msk.f32.gmra.mrb[26].mxu0 %vm570_vm2, %v3411_v4 }
 0x2be   :  { %2577 = vmatprep.mubr.msk.f32.mxu0 %vm570_vm2, %v3415_v6 }
 0x2c1   :  { %2578 = vmatmul.mubr.msk.f32.gmra.mrb[28].mxu0 %vm570_vm2, %v3419_v7 }
 0x2c2   :  { %2580 = vmatprep.mubr.msk.f32.mxu0 %vm570_vm2, %v3425_v10 }
 0x2c5   :  { %2581 = vmatmul.mubr.msk.f32.gmra.mrb[30].mxu0 %vm570_vm2, %v3427_v11 }
 0x37c   :  { %v2563_v12 = vpop.f32.mrb[16].mxu0 }
 0x37d   :  { %v495_v13 = vpop.f32.mrb[17].mxu0  ;;  %v543_v16 = vadd.f32 %v2563_v12, %v2235_v58  ;;  %v892_v12 = vld [vmem:[#allocation14] sm:$0xff] }
 0x37e   :  { %v541_v14 = vadd.f32 %v2235_v58, %v495_v13  ;;  %v2564_v15 = vpop.f32.mrb[18].mxu0  ;;  %2627 = vmatprep.subr.mxu1 %v892_v12  ;;  %v1215_v13 = vld [vmem:[#allocation17 + $0x8] sm:$0xff] }
 0x37f   :  { %v498_v17 = vpop.f32.mrb[19].mxu0  ;;  %v544_v20 = vadd.f32 %v2564_v15, %v2235_v58  ;;  %v3439_v22 = vmax.f32 %v543_v16, 0.0  ;;  %2628 = vmatpush3.msra.mxu1 %v892_v12 }
 0x380   :  { %v3433_v18 = vmax.f32 %v541_v14, 0.0  ;;  %v542_v19 = vadd.f32 %v2235_v58, %v498_v17  ;;  %2685 = vmatprep.subr.mxu1 %v1215_v13  ;;  %v3482_v14 = vld [vmem:[#allocation13] ss:$0 sm:$0xff] }
 0x381   :  { %v3445_v25 = vmax.f32 %v544_v20, 0.0 }
 0x382   :  { %v3435_v21 = vmax.f32 %v542_v19, 0.0  ;;  %2583 = vmatprep.mubr.msk.f32.mxu0 %vm570_vm2, %v3433_v18 }
 0x384   :  { %v2567_v23 = vpop.f32.mrb[20].mxu0  ;;  %2584 = vmatmul.mubr.msk.f32.gmra.mrb[32].mxu0 %vm570_vm2, %v3435_v21 }
 0x385   :  { %v511_v24 = vpop.f32.mrb[21].mxu0  ;;  %2586 = vmatprep.mubr.msk.f32.mxu0 %vm570_vm2, %v3439_v22  ;;  %v547_v28 = vadd.f32 %v2567_v23, %v2235_v58 }
 0x386   :  { %v545_v26 = vadd.f32 %v2235_v58, %v511_v24  ;;  %v2568_v27 = vpop.f32.mrb[22].mxu0 }
 0x387   :  { %v514_v29 = vpop.f32.mrb[23].mxu0  ;;  %v548_v32 = vadd.f32 %v2568_v27, %v2235_v58  ;;  %v3455_v34 = vmax.f32 %v547_v28, 0.0 }
 0x388   :  { %v3447_v30 = vmax.f32 %v545_v26, 0.0  ;;  %v546_v31 = vadd.f32 %v2235_v58, %v514_v29  ;;  %2587 = vmatmul.mubr.msk.f32.gmra.mrb[34].mxu0 %vm570_vm2, %v3445_v25 }
 0x389   :  { %v3461_v37 = vmax.f32 %v548_v32, 0.0 }
 0x38a   :  { %v3451_v33 = vmax.f32 %v546_v31, 0.0  ;;  %2589 = vmatprep.mubr.msk.f32.mxu0 %vm570_vm2, %v3447_v30 }
 0x38c   :  { %2590 = vmatmul.mubr.msk.f32.gmra.mrb[36].mxu0 %vm570_vm2, %v3451_v33  ;;  %v2573_v35 = vpop.f32.mrb[24].mxu0 }
 0x38d   :  { %2592 = vmatprep.mubr.msk.f32.mxu0 %vm570_vm2, %v3455_v34  ;;  %v685_v36 = vpop.f32.mrb[25].mxu0 }
 0x38e   :  { %v764_v38 = vpack.c.bf16 %v2573_v35, %v685_v36  ;;  %v3504_v35 = vld [vmem:[#allocation17] sm:$0xff] }
 0x390   :  { %2593 = vmatmul.mubr.msk.f32.gmra.mrb[38].mxu0 %vm570_vm2, %v3461_v37  ;;  %v2576_v39 = vpop.f32.mrb[26].mxu0  ;;  %2595 = vmatprep.subr.bf16.mxu0 %v764_v38 }
 0x391   :  { %v695_v40 = vpop.f32.mrb[27].mxu0  ;;  %2596 = vmatpush3.bf16.msra.mxu0 %v764_v38  ;;  %2611 = vmatprep.mubr.bf16.mxu0 %v3465_v48 }
 0x392   :  { %v765_v41 = vpack.c.bf16 %v2576_v39, %v695_v40 }
 0x394   :  { %v2579_v42 = vpop.f32.mrb[28].mxu0  ;;  %2597 = vmatprep.subr.bf16.mxu0 %v765_v41 }
 0x395   :  { %v705_v43 = vpop.f32.mrb[29].mxu0  ;;  %2598 = vmatpush3.bf16.msra.mxu0 %v765_v41 }
 0x396   :  { %v766_v44 = vpack.c.bf16 %v2579_v42, %v705_v43 }
 0x398   :  { %2599 = vmatprep.subr.bf16.mxu0 %v766_v44  ;;  %v2582_v45 = vpop.f32.mrb[30].mxu0 }
 0x399   :  { %2600 = vmatpush3.bf16.msra.mxu0 %v766_v44  ;;  %v715_v46 = vpop.f32.mrb[31].mxu0 }
 0x39a   :  { %v767_v47 = vpack.c.bf16 %v2582_v45, %v715_v46 }
 0x39c   :  { %2601 = vmatprep.subr.bf16.mxu0 %v767_v47 }
 0x39d   :  { %2602 = vmatpush3.bf16.msra.mxu0 %v767_v47 }
 0x457   :  { %v2585_v49 = vpop.f32.mrb[32].mxu0 }
 0x458   :  { %v725_v50 = vpop.f32.mrb[33].mxu0 }
 0x459   :  { %v768_v51 = vpack.c.bf16 %v2585_v49, %v725_v50 }
 0x45b   :  { %v2588_v52 = vpop.f32.mrb[34].mxu0  ;;  %2603 = vmatprep.subr.bf16.mxu0 %v768_v51 }
 0x45c   :  { %v735_v53 = vpop.f32.mrb[35].mxu0  ;;  %2604 = vmatpush3.bf16.msra.mxu0 %v768_v51 }
 0x45d   :  { %v769_v55 = vpack.c.bf16 %v2588_v52, %v735_v53 }
 0x45f   :  { %v2591_v58 = vpop.f32.mrb[36].mxu0  ;;  %2605 = vmatprep.subr.bf16.mxu0 %v769_v55 }
 0x460   :  { %v745_v59 = vpop.f32.mrb[37].mxu0  ;;  %2606 = vmatpush3.bf16.msra.mxu0 %v769_v55 }
 0x461   :  { %v770_v62 = vpack.c.bf16 %v2591_v58, %v745_v59 }
 0x463   :  { %v2594_v63 = vpop.f32.mrb[38].mxu0  ;;  %2607 = vmatprep.subr.bf16.mxu0 %v770_v62 }
 0x464   :  { %v755_v1 = vpop.f32.mrb[39].mxu0  ;;  %2608 = vmatpush3.bf16.msra.mxu0 %v770_v62 }
 0x465   :  { %v771_v3 = vpack.c.bf16 %v2594_v63, %v755_v1 }
 0x467   :  { %2609 = vmatprep.subr.bf16.mxu0 %v771_v3 }
 0x468   :  { %2610 = vmatpush3.bf16.msra.mxu0 %v771_v3 }
 0x46b   :  { %2612 = vmatmul.mubr.bf16.vlgmr.msra.gmra.mrb[40].mxu0 %v3468_v5 }
 0x46c   :  { %2615 = vmatprep.mubr.bf16.mxu0 %v3470_v8 }
 0x473   :  { %2616 = vmatmul.mubr.bf16.gmra.mrb[44].mxu0 %v3474_v9 }
 0x474   :  { %2619 = vmatprep.mubr.bf16.mxu0 %v3389_v54 }
 0x47b   :  { %2620 = vmatmul.mubr.bf16.gmra.mrb[48].mxu0 %v3392_v56 }
 0x47c   :  { %2623 = vmatprep.mubr.bf16.mxu0 %v3394_v57 }
 0x483   :  { %2624 = vmatmul.mubr.bf16.gmra.mrb[52].mxu0 %v3398_v60 }
 0x484   :  { %2669 = vmatprep.mubr.bf16.mxu0 %v3465_v48 }
 0x53e   :  { %v2613_v15 = vpop.f32.mrb[40].mxu0 }
 0x53f   :  { %v822_v16 = vadd.f32 %v2613_v15, %v3482_v14  ;;  %v813_v17 = vpop.f32.mrb[41].mxu0 }
 0x540   :  { %v814_v19 = vadd.f32 %v3482_v14, %v813_v17  ;;  %v2614_v20 = vpop.f32.mrb[42].mxu0 }
 0x541   :  { %v3486_v23 = vmax.f32 %v822_v16, 0.0  ;;  %v825_v24 = vadd.f32 %v2614_v20, %v3482_v14  ;;  %v816_v26 = vpop.f32.mrb[43].mxu0 }
 0x542   :  { %v3489_v27 = vmax.f32 %v814_v19, 0.0  ;;  %v817_v28 = vadd.f32 %v3482_v14, %v816_v26 }
 0x543   :  { %1848 = vrot.lane.b32.xlu1 %v3486_v23, %s3143_s16  ;;  %v3500_v31 = vmax.f32 %v825_v24, 0.0 }
 0x544   :  { %v3494_v29 = vmax.f32 %v817_v28, 0.0  ;;  %1844 = vrot.lane.b32.xlu0 %v3489_v27, %s3143_s16  ;;  %2629 = vmatprep.mubr.msk.f32.mxu1 %vm570_vm2, %v3489_v27 }
 0x546   :  { %v2617_v32 = vpop.f32.mrb[44].mxu0  ;;  %2630 = vmatmul.mubr.msk.f32.vlgmr.msra.gmra.mrb[8].mxu1 %vm570_vm2, %v3494_v29 }
 0x547   :  { %v838_v36 = vadd.f32 %v2617_v32, %v3482_v14  ;;  %1850 = vrot.lane.b32.xlu1 %v3500_v31, %s3143_s16  ;;  %v829_v38 = vpop.f32.mrb[45].mxu0  ;;  %2632 = vmatprep.mubr.msk.f32.mxu1 %vm570_vm2, %v3486_v23 }
 0x548   :  { %v830_v39 = vadd.f32 %v3482_v14, %v829_v38  ;;  %v2618_v40 = vpop.f32.mrb[46].mxu0  ;;  %1846 = vrot.lane.b32.xlu0 %v3494_v29, %s3143_s16  ;;  %2686 = vmatpush3.msra.mxu1 %v1215_v13 }
 0x549   :  { %v3514_v41 = vmax.f32 %v838_v36, 0.0  ;;  %v841_v42 = vadd.f32 %v2618_v40, %v3482_v14  ;;  %v832_v43 = vpop.f32.mrb[47].mxu0  ;;  %2711 = vmatprep.subr.mxu1 %v3504_v35 }
 0x54a   :  { %v880_v44 = vmax.f32 %v830_v39, 0.0  ;;  %v833_v45 = vadd.f32 %v3482_v14, %v832_v43  ;;  %2633 = vmatmul.mubr.msk.f32.gmra.mrb[10].mxu1 %vm570_vm2, %v3500_v31 }
 0x54b   :  { %v883_v46 = vmax.f32 %v841_v42, 0.0 }
 0x54c   :  { %v881_v47 = vmax.f32 %v833_v45, 0.0  ;;  %1856 = vrot.lane.b32.xlu0 %v3514_v41, %s3143_s16  ;;  %2635 = vmatprep.mubr.msk.f32.mxu1 %vm570_vm2, %v880_v44 }
 0x54d   :  { %1858 = vrot.lane.b32.xlu1 %v883_v46, %s3143_s16 }
 0x54e   :  { %v2621_v49 = vpop.f32.mrb[48].mxu0  ;;  %2636 = vmatmul.mubr.msk.f32.gmra.mrb[12].mxu1 %vm570_vm2, %v881_v47 }
 0x54f   :  { %v854_v50 = vadd.f32 %v2621_v49, %v3482_v14  ;;  %v845_v51 = vpop.f32.mrb[49].mxu0  ;;  %2638 = vmatprep.mubr.msk.f32.mxu1 %vm570_vm2, %v3514_v41 }
 0x550   :  { %v846_v52 = vadd.f32 %v3482_v14, %v845_v51  ;;  %v2622_v53 = vpop.f32.mrb[50].mxu0  ;;  %1852 = vrot.lane.b32.xlu0 %v880_v44, %s3143_s16 }
 0x551   :  { %v886_v55 = vmax.f32 %v854_v50, 0.0  ;;  %v857_v58 = vadd.f32 %v2622_v53, %v3482_v14  ;;  %v848_v59 = vpop.f32.mrb[51].mxu0  ;;  %1854 = vrot.lane.b32.xlu1 %v881_v47, %s3143_s16 }
 0x552   :  { %v884_v62 = vmax.f32 %v846_v52, 0.0  ;;  %v849_v63 = vadd.f32 %v3482_v14, %v848_v59  ;;  %2639 = vmatmul.mubr.msk.f32.gmra.mrb[14].mxu1 %vm570_vm2, %v883_v46 }
 0x553   :  { %v887_v1 = vmax.f32 %v857_v58, 0.0 }
 0x554   :  { %v885_v3 = vmax.f32 %v849_v63, 0.0  ;;  %1864 = vrot.lane.b32.xlu0 %v886_v55, %s3143_s16  ;;  %2641 = vmatprep.mubr.msk.f32.mxu1 %vm570_vm2, %v884_v62  ;;  %v3617_v63 = vld [vmem:[#allocation16] ss:$0 sm:$0xff] }
 0x555   :  { %1866 = vrot.lane.b32.xlu1 %v887_v1, %s3143_s16 }
 0x556   :  { %v2625_v12 = vpop.f32.mrb[52].mxu0  ;;  %2642 = vmatmul.mubr.msk.f32.gmra.mrb[16].mxu1 %vm570_vm2, %v885_v3 }
 0x557   :  { %v870_v13 = vadd.f32 %v2625_v12, %v3482_v14  ;;  %v861_v15 = vpop.f32.mrb[53].mxu0  ;;  %2644 = vmatprep.mubr.msk.f32.mxu1 %vm570_vm2, %v886_v55 }
 0x558   :  { %v862_v16 = vadd.f32 %v3482_v14, %v861_v15  ;;  %v2626_v17 = vpop.f32.mrb[54].mxu0  ;;  %1860 = vrot.lane.b32.xlu0 %v884_v62, %s3143_s16 }
 0x559   :  { %v890_v19 = vmax.f32 %v870_v13, 0.0  ;;  %v873_v20 = vadd.f32 %v2626_v17, %v3482_v14  ;;  %v864_v24 = vpop.f32.mrb[55].mxu0  ;;  %1862 = vrot.lane.b32.xlu1 %v885_v3, %s3143_s16 }
 0x55a   :  { %v888_v26 = vmax.f32 %v862_v16, 0.0  ;;  %v865_v28 = vadd.f32 %v3482_v14, %v864_v24  ;;  %2645 = vmatmul.mubr.msk.f32.gmra.mrb[18].mxu1 %vm570_vm2, %v887_v1  ;;  %v1216_v14 = vld [vmem:[#allocation17 + $0x10] sm:$0xff] }
 0x55b   :  { %v891_v32 = vmax.f32 %v873_v20, 0.0 }
 0x55c   :  { %v889_v36 = vmax.f32 %v865_v28, 0.0  ;;  %1872 = vrot.lane.b32.xlu0 %v890_v19, %s3143_s16  ;;  %2647 = vmatprep.mubr.msk.f32.mxu1 %vm570_vm2, %v888_v26 }
 0x55d   :  { %1874 = vrot.lane.b32.xlu1 %v891_v32, %s3143_s16 }
 0x55e   :  { %2648 = vmatmul.mubr.msk.f32.gmra.mrb[20].mxu1 %vm570_vm2, %v889_v36 }
 0x55f   :  { %2650 = vmatprep.mubr.msk.f32.mxu1 %vm570_vm2, %v890_v19 }
 0x560   :  { %1868 = vrot.lane.b32.xlu0 %v888_v26, %s3143_s16 }
 0x561   :  { %1870 = vrot.lane.b32.xlu1 %v889_v36, %s3143_s16 }
 0x562   :  { %2651 = vmatmul.mubr.msk.f32.gmra.mrb[22].mxu1 %vm570_vm2, %v891_v32 }
 0x563   :  { %2687 = vmatprep.mubr.msk.f32.mxu1 %vm570_vm2, %v3489_v27 }
 0x566   :  { %2688 = vmatmul.mubr.msk.f32.vlgmr.msra.gmra.mrb[24].mxu1 %vm570_vm2, %v3494_v29 }
 0x567   :  { %2690 = vmatprep.mubr.msk.f32.mxu1 %vm570_vm2, %v3486_v23  ;;  %2712 = vmatpush3.msra.mxu1 %v3504_v35 }
 0x568   :  { %2737 = vmatprep.subr.mxu1 %v1216_v14 }
 0x56a   :  { %2691 = vmatmul.mubr.msk.f32.gmra.mrb[26].mxu1 %vm570_vm2, %v3500_v31 }
 0x56b   :  { %2693 = vmatprep.mubr.msk.f32.mxu1 %vm570_vm2, %v880_v44 }
 0x56e   :  { %2694 = vmatmul.mubr.msk.f32.gmra.mrb[28].mxu1 %vm570_vm2, %v881_v47 }
 0x56f   :  { %2696 = vmatprep.mubr.msk.f32.mxu1 %vm570_vm2, %v3514_v41 }
 0x572   :  { %2697 = vmatmul.mubr.msk.f32.gmra.mrb[30].mxu1 %vm570_vm2, %v883_v46 }
 0x573   :  { %2699 = vmatprep.mubr.msk.f32.mxu1 %vm570_vm2, %v884_v62 }
 0x576   :  { %2700 = vmatmul.mubr.msk.f32.gmra.mrb[32].mxu1 %vm570_vm2, %v885_v3 }
 0x577   :  { %2702 = vmatprep.mubr.msk.f32.mxu1 %vm570_vm2, %v886_v55 }
 0x57a   :  { %2703 = vmatmul.mubr.msk.f32.gmra.mrb[34].mxu1 %vm570_vm2, %v887_v1 }
 0x57b   :  { %2705 = vmatprep.mubr.msk.f32.mxu1 %vm570_vm2, %v888_v26 }
 0x57e   :  { %2706 = vmatmul.mubr.msk.f32.gmra.mrb[36].mxu1 %vm570_vm2, %v889_v36 }
 0x57f   :  { %2708 = vmatprep.mubr.msk.f32.mxu1 %vm570_vm2, %v890_v19 }
 0x582   :  { %2709 = vmatmul.mubr.msk.f32.gmra.mrb[38].mxu1 %vm570_vm2, %v891_v32 }
 0x583   :  { %2713 = vmatprep.mubr.msk.f32.mxu1 %vm570_vm2, %v3400_v61 }
 0x586   :  { %2714 = vmatmul.mubr.msk.f32.vlgmr.msra.gmra.mrb[24].mxu1 %vm570_vm2, %v3405_v0 }
 0x587   :  { %2716 = vmatprep.mubr.msk.f32.mxu1 %vm570_vm2, %v3407_v2  ;;  %2738 = vmatpush3.msra.mxu1 %v1216_v14 }
 0x58a   :  { %2717 = vmatmul.mubr.msk.f32.gmra.mrb[26].mxu1 %vm570_vm2, %v3411_v4 }
 0x58b   :  { %2719 = vmatprep.mubr.msk.f32.mxu1 %vm570_vm2, %v3415_v6 }
 0x58e   :  { %2720 = vmatmul.mubr.msk.f32.gmra.mrb[28].mxu1 %vm570_vm2, %v3419_v7 }
 0x58f   :  { %2722 = vmatprep.mubr.msk.f32.mxu1 %vm570_vm2, %v3425_v10 }
 0x592   :  { %2723 = vmatmul.mubr.msk.f32.gmra.mrb[30].mxu1 %vm570_vm2, %v3427_v11 }
 0x593   :  { %2725 = vmatprep.mubr.msk.f32.mxu1 %vm570_vm2, %v3433_v18 }
 0x596   :  { %2726 = vmatmul.mubr.msk.f32.gmra.mrb[32].mxu1 %vm570_vm2, %v3435_v21 }
 0x597   :  { %2728 = vmatprep.mubr.msk.f32.mxu1 %vm570_vm2, %v3439_v22 }
 0x59a   :  { %2729 = vmatmul.mubr.msk.f32.gmra.mrb[34].mxu1 %vm570_vm2, %v3445_v25 }
 0x59b   :  { %2731 = vmatprep.mubr.msk.f32.mxu1 %vm570_vm2, %v3447_v30 }
 0x59e   :  { %2732 = vmatmul.mubr.msk.f32.gmra.mrb[36].mxu1 %vm570_vm2, %v3451_v33 }
 0x59f   :  { %2734 = vmatprep.mubr.msk.f32.mxu1 %vm570_vm2, %v3455_v34 }
 0x5a2   :  { %2735 = vmatmul.mubr.msk.f32.gmra.mrb[38].mxu1 %vm570_vm2, %v3461_v37 }
 0x619   :  { %v2631_v23 = vpop.f32.mrb[8].mxu1 }
 0x61a   :  { %v1007_v27 = vpop.f32.mrb[9].mxu1 }
 0x61b   :  { %v1086_v29 = vpack.c.bf16 %v2631_v23, %v1007_v27 }
 0x61d   :  { %v2634_v31 = vpop.f32.mrb[10].mxu1  ;;  %2653 = vmatprep.subr.bf16.mxu0 %v1086_v29 }
 0x61e   :  { %v1017_v35 = vpop.f32.mrb[11].mxu1  ;;  %2654 = vmatpush3.bf16.msra.mxu0 %v1086_v29 }
 0x61f   :  { %v1087_v38 = vpack.c.bf16 %v2634_v31, %v1017_v35 }
 0x621   :  { %v2637_v39 = vpop.f32.mrb[12].mxu1  ;;  %2655 = vmatprep.subr.bf16.mxu0 %v1087_v38 }
 0x622   :  { %v1027_v40 = vpop.f32.mrb[13].mxu1  ;;  %2656 = vmatpush3.bf16.msra.mxu0 %v1087_v38 }
 0x623   :  { %v1088_v41 = vpack.c.bf16 %v2637_v39, %v1027_v40 }
 0x625   :  { %v2640_v42 = vpop.f32.mrb[14].mxu1  ;;  %2657 = vmatprep.subr.bf16.mxu0 %v1088_v41 }
 0x626   :  { %v1037_v43 = vpop.f32.mrb[15].mxu1  ;;  %2658 = vmatpush3.bf16.msra.mxu0 %v1088_v41 }
 0x627   :  { %v1089_v44 = vpack.c.bf16 %v2640_v42, %v1037_v43 }
 0x629   :  { %v2643_v45 = vpop.f32.mrb[16].mxu1  ;;  %2659 = vmatprep.subr.bf16.mxu0 %v1089_v44 }
 0x62a   :  { %v1047_v46 = vpop.f32.mrb[17].mxu1  ;;  %2660 = vmatpush3.bf16.msra.mxu0 %v1089_v44 }
 0x62b   :  { %v1090_v47 = vpack.c.bf16 %v2643_v45, %v1047_v46 }
 0x62d   :  { %v2646_v49 = vpop.f32.mrb[18].mxu1  ;;  %2661 = vmatprep.subr.bf16.mxu0 %v1090_v47 }
 0x62e   :  { %v1057_v50 = vpop.f32.mrb[19].mxu1  ;;  %2662 = vmatpush3.bf16.msra.mxu0 %v1090_v47 }
 0x62f   :  { %v1091_v51 = vpack.c.bf16 %v2646_v49, %v1057_v50 }
 0x631   :  { %v2649_v52 = vpop.f32.mrb[20].mxu1  ;;  %2663 = vmatprep.subr.bf16.mxu0 %v1091_v51 }
 0x632   :  { %v1067_v53 = vpop.f32.mrb[21].mxu1  ;;  %2664 = vmatpush3.bf16.msra.mxu0 %v1091_v51 }
 0x633   :  { %v1092_v55 = vpack.c.bf16 %v2649_v52, %v1067_v53 }
 0x635   :  { %v2652_v58 = vpop.f32.mrb[22].mxu1  ;;  %2665 = vmatprep.subr.bf16.mxu0 %v1092_v55 }
 0x636   :  { %v1077_v59 = vpop.f32.mrb[23].mxu1  ;;  %2666 = vmatpush3.bf16.msra.mxu0 %v1092_v55 }
 0x637   :  { %v1093_v62 = vpack.c.bf16 %v2652_v58, %v1077_v59 }
 0x639   :  { %2667 = vmatprep.subr.bf16.mxu0 %v1093_v62 }
 0x63a   :  { %2668 = vmatpush3.bf16.msra.mxu0 %v1093_v62 }
 0x63d   :  { %2670 = vmatmul.mubr.bf16.vlgmr.msra.gmra.mrb[56].mxu0 %v3468_v5 }
 0x63e   :  { %2673 = vmatprep.mubr.bf16.mxu0 %v3470_v8 }
 0x645   :  { %2674 = vmatmul.mubr.bf16.gmra.mrb[60].mxu0 %v3474_v9 }
 0x646   :  { %2677 = vmatprep.mubr.bf16.mxu0 %v3389_v54 }
 0x64d   :  { %2678 = vmatmul.mubr.bf16.gmra.mrb[64].mxu0 %v3392_v56 }
 0x64e   :  { %2681 = vmatprep.mubr.bf16.mxu0 %v3394_v57 }
 0x655   :  { %2682 = vmatmul.mubr.bf16.gmra.mrb[68].mxu0 %v3398_v60 }
 0x656   :  { %2779 = vmatprep.mubr.bf16.mxu0 %v3465_v48 }
 0x710   :  { %v2671_v1 = vpop.f32.mrb[56].mxu0 }
 0x711   :  { %v1144_v3 = vadd.f32 %v2671_v1, %v3617_v63  ;;  %v1135_v12 = vpop.f32.mrb[57].mxu0 }
 0x712   :  { %v1136_v13 = vadd.f32 %v3617_v63, %v1135_v12  ;;  %v2672_v15 = vpop.f32.mrb[58].mxu0 }
 0x713   :  { %v1200_v16 = vmax.f32 %v1144_v3, 0.0  ;;  %v1147_v17 = vadd.f32 %v2672_v15, %v3617_v63  ;;  %v1138_v19 = vpop.f32.mrb[59].mxu0 }
 0x714   :  { %v1198_v20 = vmax.f32 %v1136_v13, 0.0  ;;  %v1139_v24 = vadd.f32 %v3617_v63, %v1138_v19 }
 0x715   :  { %v1201_v26 = vmax.f32 %v1147_v17, 0.0  ;;  %1896 = vrot.lane.b32.xlu0 %v1200_v16, %s3150_s0 }
 0x716   :  { %v1199_v48 = vmax.f32 %v1139_v24, 0.0  ;;  %2739 = vmatprep.mubr.msk.f32.mxu1 %vm570_vm2, %v1198_v20 }
 0x717   :  { %1898 = vrot.lane.b32.xlu1 %v1201_v26, %s3150_s0 }
 0x718   :  { %v2675_v28 = vpop.f32.mrb[60].mxu0  ;;  %2740 = vmatmul.mubr.msk.f32.vlgmr.msra.gmra.mrb[24].mxu1 %vm570_vm2, %v1199_v48 }
 0x719   :  { %v1160_v32 = vadd.f32 %v2675_v28, %v3617_v63  ;;  %v1151_v36 = vpop.f32.mrb[61].mxu0  ;;  %1892 = vrot.lane.b32.xlu0 %v1198_v20, %s3150_s0  ;;  %2742 = vmatprep.mubr.msk.f32.mxu1 %vm570_vm2, %v1200_v16  ;;  %v3669_v20 = vpop.permute.xlu1 %1848 }
 0x71a   :  { %v1152_v14 = vadd.f32 %v3617_v63, %v1151_v36  ;;  %v2676_v23 = vpop.f32.mrb[62].mxu0 }
 0x71b   :  { %v1204_v27 = vmax.f32 %v1160_v32, 0.0  ;;  %v1163_v29 = vadd.f32 %v2676_v23, %v3617_v63  ;;  %v1154_v31 = vpop.f32.mrb[63].mxu0  ;;  %1894 = vrot.lane.b32.xlu1 %v1199_v48, %s3150_s0 }
 0x71c   :  { %v1202_v35 = vmax.f32 %v1152_v14, 0.0  ;;  %v1155_v38 = vadd.f32 %v3617_v63, %v1154_v31  ;;  %2743 = vmatmul.mubr.msk.f32.gmra.mrb[26].mxu1 %vm570_vm2, %v1201_v26 }
 0x71d   :  { %v1205_v39 = vmax.f32 %v1163_v29, 0.0  ;;  %1904 = vrot.lane.b32.xlu0 %v1204_v27, %s3150_s0  ;;  %v3673_v26 = vpop.permute.xlu1 %1850 }
 0x71e   :  { %v1203_v40 = vmax.f32 %v1155_v38, 0.0  ;;  %2745 = vmatprep.mubr.msk.f32.mxu1 %vm570_vm2, %v1202_v35 }
 0x71f   :  { %1906 = vrot.lane.b32.xlu1 %v1205_v39, %s3150_s0 }
 0x720   :  { %v2679_v41 = vpop.f32.mrb[64].mxu0  ;;  %2746 = vmatmul.mubr.msk.f32.gmra.mrb[28].mxu1 %vm570_vm2, %v1203_v40 }
 0x721   :  { %v1176_v42 = vadd.f32 %v2679_v41, %v3617_v63  ;;  %v1167_v43 = vpop.f32.mrb[65].mxu0  ;;  %1900 = vrot.lane.b32.xlu0 %v1202_v35, %s3150_s0  ;;  %2748 = vmatprep.mubr.msk.f32.mxu1 %vm570_vm2, %v1204_v27  ;;  %v3677_v28 = vpop.permute.xlu1 %1858 }
 0x722   :  { %v1168_v44 = vadd.f32 %v3617_v63, %v1167_v43  ;;  %v2680_v45 = vpop.f32.mrb[66].mxu0 }
 0x723   :  { %v1208_v46 = vmax.f32 %v1176_v42, 0.0  ;;  %v1179_v47 = vadd.f32 %v2680_v45, %v3617_v63  ;;  %v1170_v49 = vpop.f32.mrb[67].mxu0  ;;  %1902 = vrot.lane.b32.xlu1 %v1203_v40, %s3150_s0 }
 0x724   :  { %v1206_v50 = vmax.f32 %v1168_v44, 0.0  ;;  %v1171_v51 = vadd.f32 %v3617_v63, %v1170_v49  ;;  %2749 = vmatmul.mubr.msk.f32.gmra.mrb[30].mxu1 %vm570_vm2, %v1205_v39 }
 0x725   :  { %v1209_v52 = vmax.f32 %v1179_v47, 0.0  ;;  %1912 = vrot.lane.b32.xlu0 %v1208_v46, %s3150_s0  ;;  %v3681_v36 = vpop.permute.xlu1 %1854 }
 0x726   :  { %v1207_v53 = vmax.f32 %v1171_v51, 0.0  ;;  %2751 = vmatprep.mubr.msk.f32.mxu1 %vm570_vm2, %v1206_v50 }
 0x727   :  { %1914 = vrot.lane.b32.xlu1 %v1209_v52, %s3150_s0 }
 0x728   :  { %v2683_v55 = vpop.f32.mrb[68].mxu0  ;;  %2752 = vmatmul.mubr.msk.f32.gmra.mrb[32].mxu1 %vm570_vm2, %v1207_v53 }
 0x729   :  { %v1192_v58 = vadd.f32 %v2683_v55, %v3617_v63  ;;  %v1183_v59 = vpop.f32.mrb[69].mxu0  ;;  %1908 = vrot.lane.b32.xlu0 %v1206_v50, %s3150_s0  ;;  %2754 = vmatprep.mubr.msk.f32.mxu1 %vm570_vm2, %v1208_v46  ;;  %v3683_v23 = vpop.permute.xlu1 %1866 }
 0x72a   :  { %v1184_v62 = vadd.f32 %v3617_v63, %v1183_v59  ;;  %v2684_v1 = vpop.f32.mrb[70].mxu0 }
 0x72b   :  { %v1212_v3 = vmax.f32 %v1192_v58, 0.0  ;;  %v1195_v12 = vadd.f32 %v2684_v1, %v3617_v63  ;;  %v1186_v13 = vpop.f32.mrb[71].mxu0  ;;  %1910 = vrot.lane.b32.xlu1 %v1207_v53, %s3150_s0 }
 0x72c   :  { %v1210_v15 = vmax.f32 %v1184_v62, 0.0  ;;  %v1187_v16 = vadd.f32 %v3617_v63, %v1186_v13  ;;  %2755 = vmatmul.mubr.msk.f32.gmra.mrb[34].mxu1 %vm570_vm2, %v1209_v52  ;;  %v3667_v63 = vpop.permute.xlu0 %1844 }
 0x72d   :  { %v1213_v17 = vmax.f32 %v1195_v12, 0.0  ;;  %1920 = vrot.lane.b32.xlu0 %v1212_v3, %s3150_s0  ;;  %v3687_v29 = vpop.permute.xlu1 %1862 }
 0x72e   :  { %v1211_v19 = vmax.f32 %v1187_v16, 0.0  ;;  %2757 = vmatprep.mubr.msk.f32.mxu1 %vm570_vm2, %v1210_v15 }
 0x72f   :  { %1922 = vrot.lane.b32.xlu1 %v1213_v17, %s3150_s0 }
 0x730   :  { %2758 = vmatmul.mubr.msk.f32.gmra.mrb[36].mxu1 %vm570_vm2, %v1211_v19  ;;  %v3671_v24 = vpop.permute.xlu0 %1846 }
 0x731   :  { %1916 = vrot.lane.b32.xlu0 %v1210_v15, %s3150_s0  ;;  %2760 = vmatprep.mubr.msk.f32.mxu1 %vm570_vm2, %v1212_v3  ;;  %v1875_v35 = vpop.permute.xlu1 %1874 }
 0x733   :  { %1918 = vrot.lane.b32.xlu1 %v1211_v19, %s3150_s0 }
 0x734   :  { %2761 = vmatmul.mubr.msk.f32.gmra.mrb[38].mxu1 %vm570_vm2, %v1213_v17  ;;  %v3675_v48 = vpop.permute.xlu0 %1856 }
 0x735   :  { %v3691_v39 = vpop.permute.xlu1 %1870 }
 0x738   :  { %v3679_v32 = vpop.permute.xlu0 %1852 }
 0x73c   :  { %v1865_v14 = vpop.permute.xlu0 %1864 }
 0x73d   :  { %v1950_v49 = vsel %vm570_vm2, %v3439_v22, %v1865_v14  ;;  %v1955_v22 = vsel %vm570_vm2, %v3461_v37, %v1875_v35 }
 0x740   :  { %v3685_v27 = vpop.permute.xlu0 %1860 }
 0x744   :  { %v1873_v31 = vpop.permute.xlu0 %1872 }
 0x745   :  { %v1954_v58 = vsel %vm570_vm2, %v3455_v34, %v1873_v31 }
 0x748   :  { %v3689_v38 = vpop.permute.xlu0 %1868 }
 0x787   :  { %v3693_v40 = vpop.permute.xlu0 %1896 }
 0x789   :  { %v3695_v41 = vpop.permute.xlu1 %1898 }
 0x78b   :  { %v3697_v42 = vpop.permute.xlu0 %1892 }
 0x78d   :  { %v3699_v43 = vpop.permute.xlu1 %1894 }
 0x78f   :  { %v3701_v44 = vpop.permute.xlu0 %1904 }
 0x791   :  { %v3703_v45 = vpop.permute.xlu1 %1906 }
 0x793   :  { %v3705_v46 = vpop.permute.xlu0 %1900 }
 0x795   :  { %v3707_v47 = vpop.permute.xlu1 %1902 }
 0x797   :  { %v1913_v50 = vpop.permute.xlu0 %1912 }
 0x798   :  { %v3712_v51 = vsel %vm1956_vm3, %v1950_v49, %v1913_v50 }
 0x799   :  { %v3714_v52 = vpop.permute.xlu1 %1914 }
 0x79b   :  { %v3716_v53 = vpop.permute.xlu0 %1908 }
 0x79d   :  { %v3718_v55 = vpop.permute.xlu1 %1910 }
 0x79f   :  { %v1921_v59 = vpop.permute.xlu0 %1920 }
 0x7a0   :  { %v3723_v62 = vsel %vm1956_vm3, %v1954_v58, %v1921_v59 }
 0x7a1   :  { %v1923_v1 = vpop.permute.xlu1 %1922 }
 0x7a2   :  { %v3728_v3 = vsel %vm1956_vm3, %v1955_v22, %v1923_v1 }
 0x7eb   :  { %v2741_v12 = vpop.f32.mrb[24].mxu1 }
 0x7ec   :  { %v1621_v13 = vpop.f32.mrb[25].mxu1 }
 0x7ed   :  { %v1716_v15 = vpack.c.bf16 %v2741_v12, %v1621_v13 }
 0x7ef   :  { %v2744_v16 = vpop.f32.mrb[26].mxu1  ;;  %2763 = vmatprep.subr.bf16.mxu0 %v1716_v15 }
 0x7f0   :  { %v1631_v17 = vpop.f32.mrb[27].mxu1  ;;  %2764 = vmatpush3.bf16.msra.mxu0 %v1716_v15 }
 0x7f1   :  { %v1717_v19 = vpack.c.bf16 %v2744_v16, %v1631_v17 }
 0x7f3   :  { %v2747_v34 = vpop.f32.mrb[28].mxu1  ;;  %2765 = vmatprep.subr.bf16.mxu0 %v1717_v19 }
 0x7f4   :  { %v1641_v14 = vpop.f32.mrb[29].mxu1  ;;  %2766 = vmatpush3.bf16.msra.mxu0 %v1717_v19 }
 0x7f5   :  { %v1718_v31 = vpack.c.bf16 %v2747_v34, %v1641_v14  ;;  %v3151_v14 = vmov 0  }
 0x7f6   :  { %2843 = vset.pattern.permute.xlu1 %v3151_v14  ;;  %2844 = vset.pattern.permute.xlu0 %v3151_v14 }
 0x7f7   :  { %v2750_v49 = vpop.f32.mrb[30].mxu1  ;;  %2767 = vmatprep.subr.bf16.mxu0 %v1718_v31 }
 0x7f8   :  { %v1651_v37 = vpop.f32.mrb[31].mxu1  ;;  %2768 = vmatpush3.bf16.msra.mxu0 %v1718_v31  ;;  %v3737_v31 = vld [vmem:[#allocation4] ss:$0 sm:$0xff] }
 0x7f9   :  { %v1719_v35 = vpack.c.bf16 %v2750_v49, %v1651_v37 }
 0x7fb   :  { %v2753_v50 = vpop.f32.mrb[32].mxu1  ;;  %2769 = vmatprep.subr.bf16.mxu0 %v1719_v35 }
 0x7fc   :  { %v1661_v58 = vpop.f32.mrb[33].mxu1  ;;  %2770 = vmatpush3.bf16.msra.mxu0 %v1719_v35 }
 0x7fd   :  { %v1720_v59 = vpack.c.bf16 %v2753_v50, %v1661_v58 }
 0x7ff   :  { %v2756_v22 = vpop.f32.mrb[34].mxu1  ;;  %2771 = vmatprep.subr.bf16.mxu0 %v1720_v59 }
 0x800   :  { %v1671_v1 = vpop.f32.mrb[35].mxu1  ;;  %2772 = vmatpush3.bf16.msra.mxu0 %v1720_v59 }
 0x801   :  { %v1721_v12 = vpack.c.bf16 %v2756_v22, %v1671_v1 }
 0x803   :  { %v2759_v13 = vpop.f32.mrb[36].mxu1  ;;  %2773 = vmatprep.subr.bf16.mxu0 %v1721_v12 }
 0x804   :  { %v1681_v15 = vpop.f32.mrb[37].mxu1  ;;  %2774 = vmatpush3.bf16.msra.mxu0 %v1721_v12 }
 0x805   :  { %v1722_v16 = vpack.c.bf16 %v2759_v13, %v1681_v15 }
 0x807   :  { %v2762_v17 = vpop.f32.mrb[38].mxu1  ;;  %2775 = vmatprep.subr.bf16.mxu0 %v1722_v16 }
 0x808   :  { %v1691_v19 = vpop.f32.mrb[39].mxu1  ;;  %2776 = vmatpush3.bf16.msra.mxu0 %v1722_v16 }
 0x809   :  { %v1723_v34 = vpack.c.bf16 %v2762_v17, %v1691_v19 }
 0x80b   :  { %2777 = vmatprep.subr.bf16.mxu0 %v1723_v34 }
 0x80c   :  { %2778 = vmatpush3.bf16.msra.mxu0 %v1723_v34 }
 0x80f   :  { %2780 = vmatmul.mubr.bf16.vlgmr.msra.gmra.mrb[72].mxu0 %v3468_v5 }
 0x810   :  { %2783 = vmatprep.mubr.bf16.mxu0 %v3470_v8 }
 0x817   :  { %2784 = vmatmul.mubr.bf16.gmra.mrb[76].mxu0 %v3474_v9 }
 0x818   :  { %2787 = vmatprep.mubr.bf16.mxu0 %v3389_v54 }
 0x81f   :  { %2788 = vmatmul.mubr.bf16.gmra.mrb[80].mxu0 %v3392_v56 }
 0x820   :  { %2791 = vmatprep.mubr.bf16.mxu0 %v3394_v57 }
 0x827   :  { %2792 = vmatmul.mubr.bf16.gmra.mrb[84].mxu0 %v3398_v60 }
 0x8e2   :  { %v2781_v49 = vpop.f32.mrb[72].mxu0 }
 0x8e3   :  { %v1774_v5 = vadd.f32 %v2781_v49, %v3737_v31  ;;  %v1765_v37 = vpop.f32.mrb[73].mxu0 }
 0x8e4   :  { %v1766_v8 = vadd.f32 %v3737_v31, %v1765_v37  ;;  %v2782_v9 = vpop.f32.mrb[74].mxu0 }
 0x8e5   :  { %2845 = vtanh.f32 %v1774_v5  ;;  %v1768_v54 = vpop.f32.mrb[75].mxu0  ;;  %v1777_v56 = vadd.f32 %v2782_v9, %v3737_v31 }
 0x8e6   :  { %2847 = vtanh.f32 %v1766_v8  ;;  %v1769_v50 = vadd.f32 %v3737_v31, %v1768_v54 }
 0x8e7   :  { %2849 = vtanh.f32 %v1777_v56 }
 0x8e8   :  { %2851 = vtanh.f32 %v1769_v50 }
 0x8ea   :  { %v2785_v57 = vpop.f32.mrb[76].mxu0 }
 0x8eb   :  { %v1781_v60 = vpop.f32.mrb[77].mxu0  ;;  %v1790_v22 = vadd.f32 %v2785_v57, %v3737_v31 }
 0x8ec   :  { %v2786_v35 = vpop.f32.mrb[78].mxu0  ;;  %v1782_v34 = vadd.f32 %v3737_v31, %v1781_v60 }
 0x8ed   :  { %v1784_v58 = vpop.f32.mrb[79].mxu0  ;;  %v1793_v12 = vadd.f32 %v2786_v35, %v3737_v31  ;;  %2853 = vtanh.f32 %v1790_v22 }
 0x8ee   :  { %v1785_v14 = vadd.f32 %v3737_v31, %v1784_v58 }
 0x8ef   :  { %v2846_v59 = vpop.eup %2845  ;;  %2855 = vtanh.f32 %v1793_v12 }
 0x8f0   :  { %v2848_v1 = vpop.eup %2847  ;;  %1985 = vperm.xlu1 %2843, %v2846_v59   ;;  %2857 = vtanh.f32 %v1782_v34 }
 0x8f1   :  { %1975 = vperm.xlu0 %2844, %v2848_v1   ;;  %v2850_v16 = vpop.eup %2849  ;;  %2859 = vtanh.f32 %v1785_v14 }
 0x8f2   :  { %v2789_v13 = vpop.f32.mrb[80].mxu0  ;;  %v2852_v5 = vpop.eup %2851 }
 0x8f3   :  { %v1797_v15 = vpop.f32.mrb[81].mxu0  ;;  %v1806_v56 = vadd.f32 %v2789_v13, %v3737_v31 }
 0x8f4   :  { %2073 = vrot.lane.b32.xlu1 %v2846_v59, %s3152_s19  ;;  %v2790_v17 = vpop.f32.mrb[82].mxu0  ;;  %v1798_v35 = vadd.f32 %v3737_v31, %v1797_v15 }
 0x8f5   :  { %1990 = vperm.xlu0 %2844, %v2850_v16   ;;  %v1800_v19 = vpop.f32.mrb[83].mxu0  ;;  %v1809_v60 = vadd.f32 %v2790_v17, %v3737_v31  ;;  %2861 = vtanh.f32 %v1806_v56 }
 0x8f6   :  { %v1801_v50 = vadd.f32 %v3737_v31, %v1800_v19 }
 0x8f7   :  { %v2854_v9 = vpop.eup %2853  ;;  %2863 = vtanh.f32 %v1809_v60 }
 0x8f8   :  { %2069 = vrot.lane.b32.xlu1 %v2848_v1, %s3152_s19  ;;  %2865 = vtanh.f32 %v1798_v35  ;;  %v1940_v35 = vsel %vm570_vm2, %v3400_v61, %v3667_v63 }
 0x8f9   :  { %2075 = vrot.lane.b32.xlu0 %v2850_v16, %s3152_s19  ;;  %v2856_v57 = vpop.eup %2855  ;;  %2867 = vtanh.f32 %v1801_v50 }
 0x8fa   :  { %v2793_v49 = vpop.f32.mrb[84].mxu0  ;;  %v2858_v58 = vpop.eup %2857 }
 0x8fb   :  { %v1813_v37 = vpop.f32.mrb[85].mxu0  ;;  %v2860_v59 = vpop.eup %2859  ;;  %v1822_v22 = vadd.f32 %v2793_v49, %v3737_v31 }
 0x8fc   :  { %1980 = vperm.xlu1 %2843, %v2852_v5   ;;  %v2794_v8 = vpop.f32.mrb[86].mxu0  ;;  %v1814_v13 = vadd.f32 %v3737_v31, %v1813_v37  ;;  %v3773_v37 = vpop.permute.xlu0 %1916 }
 0x8fd   :  { %2071 = vrot.lane.b32.xlu0 %v2852_v5, %s3152_s19  ;;  %v1816_v54 = vpop.f32.mrb[87].mxu0  ;;  %2869 = vtanh.f32 %v1822_v22  ;;  %v1825_v15 = vadd.f32 %v2794_v8, %v3737_v31 }
 0x8fe   :  { %2871 = vtanh.f32 %v1814_v13  ;;  %v1817_v19 = vadd.f32 %v3737_v31, %v1816_v54  ;;  %v3771_v31 = vpop.permute.xlu1 %1918 }
 0x8ff   :  { %v2862_v1 = vpop.eup %2861  ;;  %2873 = vtanh.f32 %v1825_v15 }
 0x900   :  { %2005 = vperm.xlu1 %2843, %v2854_v9   ;;  %2875 = vtanh.f32 %v1817_v19 }
 0x901   :  { %2010 = vperm.xlu0 %2844, %v2856_v57   ;;  %v2864_v12 = vpop.eup %2863 }
 0x902   :  { %v2866_v16 = vpop.eup %2865 }
 0x903   :  { %v2868_v17 = vpop.eup %2867 }
 0x904   :  { %2081 = vrot.lane.b32.xlu1 %v2854_v9, %s3152_s19  ;;  %v1942_v9 = vsel %vm570_vm2, %v3407_v2, %v3669_v20  ;;  %v1943_v2 = vsel %vm570_vm2, %v3411_v4, %v3673_v26  ;;  %v1957_v20 = vsel %vm1956_vm3, %v1940_v35, %v3697_v42  ;;  %v1941_v26 = vsel %vm570_vm2, %v3405_v0, %v3671_v24 }
 0x905   :  { %2083 = vrot.lane.b32.xlu0 %v2856_v57, %s3152_s19  ;;  %v1959_v56 = vsel %vm1956_vm3, %v1942_v9, %v3693_v40  ;;  %v1946_v0 = vsel %vm570_vm2, %v3425_v10, %v3675_v48 }
 0x907   :  { %v2870_v34 = vpop.eup %2869 }
 0x908   :  { %1995 = vperm.xlu1 %2843, %v2858_v58   ;;  %v2872_v14 = vpop.eup %2871 }
 0x909   :  { %2000 = vperm.xlu0 %2844, %v2860_v59   ;;  %v2874_v49 = vpop.eup %2873 }
 0x90a   :  { %v2876_v5 = vpop.eup %2875 }
 0x90c   :  { %2077 = vrot.lane.b32.xlu1 %v2858_v58, %s3152_s19 }
 0x90d   :  { %2079 = vrot.lane.b32.xlu0 %v2860_v59, %s3152_s19 }
 0x910   :  { %2025 = vperm.xlu1 %2843, %v2862_v1  }
 0x911   :  { %2030 = vperm.xlu0 %2844, %v2864_v12  }
 0x914   :  { %2015 = vperm.xlu1 %2843, %v2866_v16  }
 0x915   :  { %2020 = vperm.xlu0 %2844, %v2868_v17  }
 0x918   :  { %2085 = vrot.lane.b32.xlu1 %v2866_v16, %s3152_s19 }
 0x919   :  { %2087 = vrot.lane.b32.xlu0 %v2868_v17, %s3152_s19  ;;  %v1958_v17 = vsel %vm1956_vm3, %v1941_v26, %v3699_v43  ;;  %v1947_v43 = vsel %vm570_vm2, %v3427_v11, %v3677_v28  ;;  %v1948_v26 = vsel %vm570_vm2, %v3433_v18, %v3685_v27  ;;  %v1951_v18 = vsel %vm570_vm2, %v3445_v25, %v3683_v23 }
 0x91c   :  { %2045 = vperm.xlu1 %2843, %v2870_v34  }
 0x91d   :  { %2091 = vrot.lane.b32.xlu0 %v2864_v12, %s3152_s19 }
 0x920   :  { %2035 = vperm.xlu1 %2843, %v2872_v14  }
 0x921   :  { %2050 = vperm.xlu0 %2844, %v2874_v49  }
 0x924   :  { %2089 = vrot.lane.b32.xlu1 %v2862_v1, %s3152_s19  ;;  %v1960_v1 = vsel %vm1956_vm3, %v1943_v2, %v3695_v41 }
 0x925   :  { %2040 = vperm.xlu0 %2844, %v2876_v5  }
 0x928   :  { %2093 = vrot.lane.b32.xlu1 %v2872_v14, %s3152_s19 }
 0x929   :  { %2095 = vrot.lane.b32.xlu0 %v2876_v5, %s3152_s19 }
 0x92c   :  { %2097 = vrot.lane.b32.xlu1 %v2870_v34, %s3152_s19 }
 0x92d   :  { %2099 = vrot.lane.b32.xlu0 %v2874_v49, %s3152_s19 }
 0x96f   :  { %v1986_v8 = vpop.permute.xlu1 %1985 }
 0x970   :  { %v1976_v54 = vpop.permute.xlu0 %1975  ;;  %v2055_v57 = vmul.f32 %v1986_v8, %v1959_v56 }
 0x971   :  { %v2053_v59 = vmul.f32 %v1976_v54, %v1957_v20  ;;  %v1963_v54 = vsel %vm1956_vm3, %v1946_v0, %v3701_v44 }
 0x973   :  { %v2074_v60 = vpop.permute.xlu1 %2073 }
 0x974   :  { %v2120_v50 = vsel %vm2117_vm4, %v2055_v57, %v2074_v60  ;;  %v1991_v58 = vpop.permute.xlu0 %1990  ;;  %v1964_v57 = vsel %vm1956_vm3, %v1947_v43, %v3703_v45  ;;  %v1944_v45 = vsel %vm570_vm2, %v3415_v6, %v3679_v32 }
 0x975   :  { %v2137_v40 = vsel %vm2134_vm5, %v2120_v50, 1.0  ;;  %v2056_v61 = vmul.f32 %v1991_v58, %v1960_v1 }
 0x976   :  { %v2154_v22 = vsel %vm2151_vm6, %v2137_v40, 0.0  ;;  %v1945_v40 = vsel %vm570_vm2, %v3419_v7, %v3681_v36 }
 0x977   :  { %2170 = vst [vmem:[#allocation19 + $0x10] sm:$0xff] %v2154_v22  ;;  %v2070_v63 = vpop.permute.xlu1 %2069  ;;  %v1962_v1 = vsel %vm1956_vm3, %v1945_v40, %v3707_v47 }
 0x978   :  { %v2118_v12 = vsel %vm2117_vm4, %v2053_v59, %v2070_v63  ;;  %v2076_v13 = vpop.permute.xlu0 %2075  ;;  %v1961_v59 = vsel %vm1956_vm3, %v1944_v45, %v3705_v46 }
 0x979   :  { %v2135_v15 = vsel %vm2134_vm5, %v2118_v12, 1.0  ;;  %v2121_v4 = vsel %vm2117_vm4, %v2056_v61, %v2076_v13 }
 0x97a   :  { %v2152_v42 = vsel %vm2151_vm6, %v2135_v15, 0.0  ;;  %v2138_v16 = vsel %vm2134_vm5, %v2121_v4, 1.0 }
 0x97b   :  { %2168 = vst [vmem:[#allocation19] sm:$0xff] %v2152_v42  ;;  %v2155_v41 = vsel %vm2151_vm6, %v2138_v16, 0.0  ;;  %v1981_v19 = vpop.permute.xlu1 %1980  ;;  %v1949_v16 = vsel %vm570_vm2, %v3435_v21, %v3687_v29  ;;  %v1968_v29 = vsel %vm1956_vm3, %v1951_v18, %v3714_v52 }
 0x97c   :  { %2171 = vst [vmem:[#allocation19 + $0x18] sm:$0xff] %v2155_v41  ;;  %v2054_v34 = vmul.f32 %v1981_v19, %v1958_v17  ;;  %v2072_v14 = vpop.permute.xlu0 %2071  ;;  %v1965_v41 = vsel %vm1956_vm3, %v1948_v26, %v3716_v53  ;;  %v1966_v19 = vsel %vm1956_vm3, %v1949_v16, %v3718_v55 }
 0x97e   :  { %v2119_v49 = vsel %vm2117_vm4, %v2054_v34, %v2072_v14 }
 0x97f   :  { %v2136_v5 = vsel %vm2134_vm5, %v2119_v49, 1.0  ;;  %v2006_v8 = vpop.permute.xlu1 %2005 }
 0x980   :  { %v2153_v24 = vsel %vm2151_vm6, %v2136_v5, 0.0  ;;  %v2011_v9 = vpop.permute.xlu0 %2010  ;;  %v2059_v56 = vmul.f32 %v2006_v8, %v1963_v54 }
 0x981   :  { %2169 = vst [vmem:[#allocation19 + $0x8] sm:$0xff] %v2153_v24  ;;  %v2060_v60 = vmul.f32 %v2011_v9, %v1964_v57 }
 0x983   :  { %v2082_v35 = vpop.permute.xlu1 %2081 }
 0x984   :  { %v2124_v50 = vsel %vm2117_vm4, %v2059_v56, %v2082_v35  ;;  %v2084_v10 = vpop.permute.xlu0 %2083 }
 0x985   :  { %v2141_v48 = vsel %vm2134_vm5, %v2124_v50, 1.0  ;;  %v2125_v58 = vsel %vm2117_vm4, %v2060_v60, %v2084_v10  ;;  %v1952_v60 = vsel %vm570_vm2, %v3447_v30, %v3689_v38  ;;  %v1953_v10 = vsel %vm570_vm2, %v3451_v33, %v3691_v39 }
 0x986   :  { %v2158_v2 = vsel %vm2151_vm6, %v2141_v48, 0.0  ;;  %v2142_v11 = vsel %vm2134_vm5, %v2125_v58, 1.0  ;;  %v1969_v48 = vsel %vm1956_vm3, %v1952_v60, %v3773_v37 }
 0x987   :  { %2174 = vst [vmem:[#allocation19 + $0x30] sm:$0xff] %v2158_v2  ;;  %v2159_v28 = vsel %vm2151_vm6, %v2142_v11, 0.0  ;;  %v1996_v44 = vpop.permute.xlu1 %1995  ;;  %v1970_v11 = vsel %vm1956_vm3, %v1953_v10, %v3771_v31 }
 0x988   :  { %2175 = vst [vmem:[#allocation19 + $0x38] sm:$0xff] %v2159_v28  ;;  %v2001_v20 = vpop.permute.xlu0 %2000  ;;  %v2057_v22 = vmul.f32 %v1996_v44, %v1961_v59 }
 0x989   :  { %v2058_v61 = vmul.f32 %v2001_v20, %v1962_v1 }
 0x98b   :  { %v2078_v63 = vpop.permute.xlu1 %2077 }
 0x98c   :  { %v2122_v12 = vsel %vm2117_vm4, %v2057_v22, %v2078_v63  ;;  %v2080_v13 = vpop.permute.xlu0 %2079 }
 0x98d   :  { %v2139_v6 = vsel %vm2134_vm5, %v2122_v12, 1.0  ;;  %v2123_v32 = vsel %vm2117_vm4, %v2058_v61, %v2080_v13 }
 0x98e   :  { %v2156_v15 = vsel %vm2151_vm6, %v2139_v6, 0.0  ;;  %v2140_v7 = vsel %vm2134_vm5, %v2123_v32, 1.0 }
 0x98f   :  { %2172 = vst [vmem:[#allocation19 + $0x20] sm:$0xff] %v2156_v15  ;;  %v2157_v36 = vsel %vm2151_vm6, %v2140_v7, 0.0  ;;  %v2026_v46 = vpop.permute.xlu1 %2025 }
 0x990   :  { %2173 = vst [vmem:[#allocation19 + $0x28] sm:$0xff] %v2157_v36  ;;  %v2031_v4 = vpop.permute.xlu0 %2030  ;;  %v2063_v56 = vmul.f32 %v2026_v46, %v3712_v51 }
 0x991   :  { %v2064_v8 = vmul.f32 %v2031_v4, %v1968_v29 }
 0x993   :  { %v2016_v47 = vpop.permute.xlu1 %2015 }
 0x994   :  { %v2021_v42 = vpop.permute.xlu0 %2020  ;;  %v2061_v17 = vmul.f32 %v2016_v47, %v1965_v41 }
 0x995   :  { %v2062_v34 = vmul.f32 %v2021_v42, %v1966_v19 }
 0x997   :  { %v2086_v14 = vpop.permute.xlu1 %2085 }
 0x998   :  { %v2126_v49 = vsel %vm2117_vm4, %v2061_v17, %v2086_v14  ;;  %v2088_v5 = vpop.permute.xlu0 %2087 }
 0x999   :  { %v2143_v27 = vsel %vm2134_vm5, %v2126_v49, 1.0  ;;  %v2127_v21 = vsel %vm2117_vm4, %v2062_v34, %v2088_v5 }
 0x99a   :  { %v2160_v53 = vsel %vm2151_vm6, %v2143_v27, 0.0  ;;  %v2144_v55 = vsel %vm2134_vm5, %v2127_v21, 1.0 }
 0x99b   :  { %2176 = vst [vmem:[#allocation19 + $0x40] sm:$0xff] %v2160_v53  ;;  %v2161_v0 = vsel %vm2151_vm6, %v2144_v55, 0.0  ;;  %v2046_v24 = vpop.permute.xlu1 %2045 }
 0x99c   :  { %2177 = vst [vmem:[#allocation19 + $0x48] sm:$0xff] %v2161_v0  ;;  %v2092_v9 = vpop.permute.xlu0 %2091  ;;  %v2067_v39 = vmul.f32 %v2046_v24, %v3723_v62 }
 0x99d   :  { %v2129_v25 = vsel %vm2117_vm4, %v2064_v8, %v2092_v9 }
 0x99e   :  { %v2146_v23 = vsel %vm2134_vm5, %v2129_v25, 1.0 }
 0x99f   :  { %v2163_v43 = vsel %vm2151_vm6, %v2146_v23, 0.0  ;;  %v2036_v54 = vpop.permute.xlu1 %2035 }
 0x9a0   :  { %2179 = vst [vmem:[#allocation19 + $0x58] sm:$0xff] %v2163_v43  ;;  %v2051_v52 = vpop.permute.xlu0 %2050  ;;  %v2065_v2 = vmul.f32 %v2036_v54, %v1969_v48 }
 0x9a1   :  { %v2068_v40 = vmul.f32 %v2051_v52, %v3728_v3 }
 0x9a3   :  { %v2090_v57 = vpop.permute.xlu1 %2089 }
 0x9a4   :  { %v2128_v35 = vsel %vm2117_vm4, %v2063_v56, %v2090_v57  ;;  %v2041_v50 = vpop.permute.xlu0 %2040 }
 0x9a5   :  { %v2145_v58 = vsel %vm2134_vm5, %v2128_v35, 1.0  ;;  %v2066_v30 = vmul.f32 %v2041_v50, %v1970_v11 }
 0x9a6   :  { %v2162_v51 = vsel %vm2151_vm6, %v2145_v58, 0.0 }
 0x9a7   :  { %2178 = vst [vmem:[#allocation19 + $0x50] sm:$0xff] %v2162_v51  ;;  %v2094_v38 = vpop.permute.xlu1 %2093 }
 0x9a8   :  { %v2130_v28 = vsel %vm2117_vm4, %v2065_v2, %v2094_v38  ;;  %v2096_v44 = vpop.permute.xlu0 %2095 }
 0x9a9   :  { %v2147_v45 = vsel %vm2134_vm5, %v2130_v28, 1.0  ;;  %v2131_v33 = vsel %vm2117_vm4, %v2066_v30, %v2096_v44 }
 0x9aa   :  { %v2164_v37 = vsel %vm2151_vm6, %v2147_v45, 0.0  ;;  %v2148_v20 = vsel %vm2134_vm5, %v2131_v33, 1.0 }
 0x9ab   :  { %2180 = vst [vmem:[#allocation19 + $0x60] sm:$0xff] %v2164_v37  ;;  %v2165_v31 = vsel %vm2151_vm6, %v2148_v20, 0.0  ;;  %v2098_v59 = vpop.permute.xlu1 %2097 }
 0x9ac   :  { %2181 = vst [vmem:[#allocation19 + $0x68] sm:$0xff] %v2165_v31  ;;  %v2132_v22 = vsel %vm2117_vm4, %v2067_v39, %v2098_v59  ;;  %v2100_v1 = vpop.permute.xlu0 %2099 }
 0x9ad   :  { %v2149_v61 = vsel %vm2134_vm5, %v2132_v22, 1.0  ;;  %v2133_v62 = vsel %vm2117_vm4, %v2068_v40, %v2100_v1 }
 0x9ae   :  { %v2166_v63 = vsel %vm2151_vm6, %v2149_v61, 0.0  ;;  %v2150_v12 = vsel %vm2134_vm5, %v2133_v62, 1.0 }
 0x9af   :  { %2182 = vst [vmem:[#allocation19 + $0x70] sm:$0xff] %v2166_v63  ;;  %v2167_v3 = vsel %vm2151_vm6, %v2150_v12, 0.0 }
 0x9b0   :  { %2183 = vst [vmem:[#allocation19 + $0x78] sm:$0xff] %v2167_v3 }
 0x9b1   :  { %3111 = shalt.err (!%p3108_p4)
}
 0x9b2   :  { %s3112_s23 = scalar_lea.hbm %s3916_s10, 2048 }
 0x9b3   :  { %p3113_p5 = scmp.ne.s32.totalorder %s3916_s10, %s3112_s23  ;;  %p3116_p6 = scmp.lt.u32.totalorder %s3112_s23, %s3916_s10 }
 0x9b5   :  { %p3118_p7 = pnand %p3116_p6, %p3113_p5 }
 0x9b7   :  { %3121 = shalt.err (!%p3118_p7)
}
 0x9b8   :  { %2195 = dma.vmem_to_hbm [thread:$0]  %s2190_s7, 2048, %s3916_s10, [#allocation7], %s3142_s6, %s3142_s6, %s3143_s16  }
 0x9b9   :  { %3136 = dma.done.wait [#allocation7], 2048  }
 0x9ba   :  { %3137 = vsyncadd [#allocation7], 4294965248 }
 0x9bb   :  { %2199 = vsyncpa [#allocation6], 1 }
 0x9bc   :  { %2200 = vsyncpa [#allocation9], 1 }
 0x9bd   :  { %2201 = vsyncpa [#allocation12], 1 }
 0x9be   :  { %2202 = vsyncpa [#allocation15], 1 }
 0x9bf   :  { %2203 = vsyncpa [#allocation18], 1 }
 0x9c0   :  { %2204 = vsyncpa [#allocation7], 1 }
 0x9c1   :  { %2205 = vsyncmov [#allocation3] }
 0x9c4   :  { %s2206_s28 = vpop.sfrf %2205 }
 0x9c5   :  { %p2319_p8 = scmp.ne.s32.totalorder %s2206_s28, 0 }
 0x9c7   :  { %2210 = shalt.err (%p2319_p8)  }
 0x9c8   :  { %2212 = vsyncmov [#allocation3 + $0x1] }
 0x9cb   :  { %s2213_s1 = vpop.sfrf %2212 }
 0x9cc   :  { %p2320_p11 = scmp.ne.s32.totalorder %s2213_s1, 0 }
 0x9ce   :  { %2217 = shalt.err (%p2320_p11)  }

</bundles_post_ra>
